<compile_context>
chip_gen: v5e
topology: v5e:2x2
jax: 0.10.0
libtpu: 0.0.40
codegen_flags: <defaults>
</compile_context>

<pallas_src>
import jax
import jax.numpy as jnp
from jax import lax
from jax.experimental import pallas as pl
from jax.experimental.pallas import tpu as pltpu


# ----------------------------- Pallas kernel --------------------------------

def _make_csp_kernel(shortcut, h_valid, w_valid, row_mask, col_mask):
    """Kernel factory; all flags / extents are static Python values."""

    def kernel(xc_ref, xp_ref, xn_ref, w1_ref, b1_ref, w2_ref, b2_ref,
               w3_ref, b3_ref, *rest):
        if shortcut:
            (out_ref,) = rest
        else:
            wsc_ref, bsc_ref, out_ref = rest

        i = pl.program_id(1)
        _, TH, Wp, Cin = xc_ref.shape
        Cout = w1_ref.shape[1]
        cdt = xc_ref.dtype                  # MXU operand dtype (f32 or bf16)
        L = (TH + 2) * Wp                   # length of each kx-shifted slab

        w1 = w1_ref[...]                    # (Cin, Cout)  cdt
        b1 = b1_ref[...]                    # (1, Cout)    f32

        def conv1(v):                       # 1x1 conv + folded bn1 + relu (f32)
            return jnp.maximum(
                jnp.dot(v, w1, preferred_element_type=jnp.float32) + b1, 0.0)

        xf = xc_ref[0].reshape(TH * Wp, Cin)    # layout-free: Wp % 8 == 0
        o1c = conv1(xf)                          # (TH*Wp, Cout) f32

        if row_mask:
            # Ragged last row tile: padded rows (>= h_valid) must act as the
            # SAME zero padding of conv2's input (conv1(0)+bias is NOT zero).
            rows_valid = jnp.clip(h_valid - i * TH, 0, TH)
            r_iota = lax.broadcasted_iota(jnp.int32, (TH * Wp, 1), 0)
            o1c = o1c * (r_iota < rows_valid * Wp).astype(jnp.float32)

        # Halo rows: recompute conv1 on the neighbouring input rows and zero
        # them at the image boundary (== SAME zero padding of conv2's input).
        top_ok = (i > 0).astype(jnp.float32)
        bot_ok = ((i + 1) * TH < h_valid).astype(jnp.float32)
        o1p = conv1(xp_ref[0, 0]) * top_ok       # (Wp, Cout)
        o1n = conv1(xn_ref[0, 0]) * bot_ok       # (Wp, Cout)

        # Flattened extended slab: output flat index r = h*Wp + w reads conv2
        # tap (ky, kx) at ext[r + ky*Wp + kx].  Single cast to the MXU operand
        # dtype here (instead of 9 per-tap casts).
        zrow = jnp.zeros((1, Cout), jnp.float32)
        ext = jnp.concatenate([zrow, o1p, o1c, o1n, zrow], axis=0).astype(cdt)

        # kx-shifted base slabs: 2 sublane shifts total (instead of 6 unaligned
        # per-tap slices); width-boundary masks applied ONCE per kx slab (the
        # mask depends only on j % Wp, identical for every ky).
        col = lax.broadcasted_iota(jnp.int32, (L, 1), 0) % Wp
        m0 = col >= 1                         # kx == 0 reads input col w-1
        m2 = col <= (w_valid - 2)             # kx == 2 reads input col w+1
        ext0 = ext[0:L]
        ext1 = ext[1:L + 1]
        ext2 = ext[2:L + 2]
        if col_mask:                          # padded width: drop cols >= w_valid
            m0 = m0 & (col <= w_valid)
            ext1 = ext1 * (col <= (w_valid - 1)).astype(cdt)
        ext0 = ext0 * m0.astype(cdt)
        ext2 = ext2 * m2.astype(cdt)
        exts = (ext0, ext1, ext2)

        # conv2 (3x3, stride 1, SAME) + folded bn2 + relu: 9 matmuls over
        # Wp-aligned slices of the pre-shifted, pre-masked, pre-cast slabs.
        # TODO(synk): for Cout == 128 on v6e/v7x, pair kx taps along the
        # contraction axis (K=256) to fill the 256-wide MXU (9 dots -> 5).
        acc = None
        for ky in range(3):
            base = ky * Wp                    # multiple of 8 -> aligned slice
            for kx in range(3):
                d = jnp.dot(exts[kx][base:base + TH * Wp], w2_ref[ky * 3 + kx],
                            preferred_element_type=jnp.float32)
                acc = d if acc is None else acc + d
        o2 = jnp.maximum(acc + b2_ref[...], 0.0)   # (TH*Wp, Cout) f32

        # conv3 (1x1) + folded bn3 (relu applied after the residual add).
        o3 = jnp.dot(o2.astype(cdt), w3_ref[...],
                     preferred_element_type=jnp.float32) + b3_ref[...]

        if shortcut:
            # TODO(synk): in the bf16 path the identity residual is bf16; pass
            # an extra f32 view of x if full residual fidelity is required.
            sc = xf.astype(jnp.float32)
        else:
            sc = jnp.dot(xf, wsc_ref[...],
                         preferred_element_type=jnp.float32) + bsc_ref[...]

        out = jnp.maximum(o3 + sc, 0.0)
        out_ref[...] = out.reshape(1, TH, Wp, Cout).astype(out_ref.dtype)

    return kernel


# ------------------------------- wrappers ------------------------------------

def _vmem_limit_bytes():
    """Generation-aware scoped-VMEM limit."""
    try:
        cap = int(pltpu.get_tpu_info().vmem_capacity_bytes)
    except Exception:
        cap = None
    if cap is not None and cap >= 96 * 1024 * 1024:
        return 80 * 1024 * 1024          # v5e / v6e: 128 MiB physical per core
    return 44 * 1024 * 1024              # v7x (64 MiB / TensorCore) or unknown


def _pick_row_tile(H, Wp, cin, cout, op_bytes, out_bytes, vmem_limit,
                   weight_bytes):
    # Live per-tile bytes per row of the tile:
    #   x tile (cdt, double-buffered)           : 2 * Wp * cin * op_bytes
    #   o1c + ext + acc/o2/o3 (f32)             : 3 * Wp * cout * 4
    #   ext cast + 3 shifted/masked slabs (cdt) : 4 * Wp * cout * op_bytes
    #   output tile (double-buffered)           : 2 * Wp * cout * out_bytes
    per_row = Wp * (2 * cin * op_bytes
                    + cout * (3 * 4 + 4 * op_bytes + 2 * out_bytes))
    budget = max(int(vmem_limit * 0.6) - weight_bytes, per_row)
    th = max(1, min(H, budget // per_row))
    if th >= 8:
        th -= th % 8
    return int(max(1, min(th, H)))


def _const_spec(a, single_buffer=False):
    zeros = (0,) * a.ndim
    if single_buffer:
        return pl.BlockSpec(a.shape, lambda b, i, _z=zeros: _z,
                            pipeline_mode=pl.Buffered(1))
    return pl.BlockSpec(a.shape, lambda b, i, _z=zeros: _z)


def csp_bottleneck_pallas_nhwc(x_nhwc, params, *, row_tile=None, use_bf16=False):
    B, H, W, Cin = x_nhwc.shape
    Cout = params['w1'].shape[1]
    shortcut = params['shortcut']

    cdt = jnp.bfloat16 if use_bf16 else jnp.float32
    op_bytes = 2 if use_bf16 else 4
    out_bytes = op_bytes                 # output emitted in the compute dtype

    Wp = ((W + 7) // 8) * 8              # sublane-aligned width (pad if needed)
    vmem_limit = _vmem_limit_bytes()
    weight_bytes = (Cin * Cout + 10 * Cout * Cout
                    + (0 if shortcut else Cin * Cout)) * op_bytes * 2
    single_buffer_w2 = (Cout >= 256) and (vmem_limit <= 48 * 1024 * 1024)

    if row_tile is None:
        TH = _pick_row_tile(H, Wp, Cin, Cout, op_bytes, out_bytes,
                            vmem_limit, weight_bytes)
    else:
        TH = int(max(1, min(row_tile, H)))
    n_tiles = pl.cdiv(H, TH)             # ragged H handled by pad + row mask
    Hp = n_tiles * TH

    xk = x_nhwc.astype(cdt)
    if (Hp != H) or (Wp != W):
        xk = jnp.pad(xk, ((0, 0), (0, Hp - H), (0, Wp - W), (0, 0)))

    w1 = params['w1'].astype(cdt)
    w2 = params['w2'].reshape(9, Cout, Cout).astype(cdt)   # HWIO -> (ky*3+kx, C, C)
    w3 = params['w3'].astype(cdt)
    b1 = params['b1'].astype(jnp.float32)
    b2 = params['b2'].astype(jnp.float32)
    b3 = params['b3'].astype(jnp.float32)

    x_curr_spec = pl.BlockSpec((1, TH, Wp, Cin), lambda b, i: (b, i, 0, 0))
    x_prev_spec = pl.BlockSpec(
        (1, 1, Wp, Cin), lambda b, i: (b, jnp.maximum(i * TH - 1, 0), 0, 0))
    x_next_spec = pl.BlockSpec(
        (1, 1, Wp, Cin), lambda b, i: (b, jnp.minimum(i * TH + TH, Hp - 1), 0, 0))

    args = [xk, xk, xk, w1, b1, w2, b2, w3, b3]
    in_specs = [x_curr_spec, x_prev_spec, x_next_spec,
                _const_spec(w1), _const_spec(b1),
                _const_spec(w2, single_buffer=single_buffer_w2),
                _const_spec(b2), _const_spec(w3), _const_spec(b3)]
    if not shortcut:
        wsc = params['wsc'].astype(cdt)
        bsc = params['bsc'].astype(jnp.float32)
        args += [wsc, bsc]
        in_specs += [_const_spec(wsc), _const_spec(bsc)]

    out = pl.pallas_call(
        _make_csp_kernel(shortcut, H, W, Hp != H, Wp != W),
        grid=(B, n_tiles),
        in_specs=in_specs,
        out_specs=pl.BlockSpec((1, TH, Wp, Cout), lambda b, i: (b, i, 0, 0)),
        out_shape=jax.ShapeDtypeStruct((B, Hp, Wp, Cout), cdt),
        compiler_params=pltpu.CompilerParams(
            dimension_semantics=("parallel", "parallel"),
            vmem_limit_bytes=vmem_limit),
    )(*args)

    if (Hp != H) or (Wp != W):
        out = out[:, :H, :W, :]
    return out


def csp_bottleneck_pallas(x_nchw, params, *, row_tile=None, use_bf16=False):
    # PyTorch-style NCHW interface; NHWC end-to-end models should call
    # csp_bottleneck_pallas_nhwc directly and skip both transposes.
    x = jnp.transpose(x_nchw, (0, 2, 3, 1))
    out = csp_bottleneck_pallas_nhwc(x, params, row_tile=row_tile,
                                     use_bf16=use_bf16)
    return jnp.transpose(out, (0, 3, 1, 2))


# ---------------- parameter construction (deterministic, eval-mode BN) -------

_BN_EPS = 1e-5


def _fold_bn(w, b, gamma, beta, mean, var):
    # w has Cout on its LAST axis; BN folds into an output-channel scale/shift.
    scale = gamma / jnp.sqrt(var + _BN_EPS)
    return w * scale, (b - mean) * scale + beta


def _bn_params(key, c):
    k1, k2, k3, k4 = jax.random.split(key, 4)
    gamma = jax.random.uniform(k1, (c,), jnp.float32, 0.5, 1.5)
    beta = jax.random.uniform(k2, (c,), jnp.float32, -0.5, 0.5)
    mean = jax.random.uniform(k3, (c,), jnp.float32, -0.5, 0.5)
    var = jax.random.uniform(k4, (c,), jnp.float32, 0.5, 1.5)
    return gamma, beta, mean, var


def init_params(key, cin, cout, shortcut=True):
    shortcut = shortcut and (cin == cout)
    ks = jax.random.split(key, 12)

    def conv_w(k, shape, fan_in):
        bound = 1.0 / jnp.sqrt(jnp.float32(fan_in))
        return jax.random.uniform(k, shape, jnp.float32, -bound, bound)

    w1 = conv_w(ks[0], (cin, cout), cin)
    b1 = conv_w(ks[1], (cout,), cin)
    w2 = conv_w(ks[2], (3, 3, cout, cout), 9 * cout)      # HWIO
    b2 = conv_w(ks[3], (cout,), 9 * cout)
    w3 = conv_w(ks[4], (cout, cout), cout)
    b3 = conv_w(ks[5], (cout,), cout)

    w1, b1 = _fold_bn(w1, b1, *_bn_params(ks[6], cout))
    w2, b2 = _fold_bn(w2, b2, *_bn_params(ks[7], cout))
    w3, b3 = _fold_bn(w3, b3, *_bn_params(ks[8], cout))

    if shortcut:
        wsc, bsc = None, None
    else:
        wsc = conv_w(ks[9], (cin, cout), cin)
        bsc = conv_w(ks[10], (cout,), cin)
        wsc, bsc = _fold_bn(wsc, bsc, *_bn_params(ks[11], cout))

    def row(b):
        return None if b is None else b.reshape(1, cout)

    return dict(w1=w1, b1=row(b1), w2=w2, b2=row(b2), w3=w3, b3=row(b3),
                wsc=wsc, bsc=row(bsc), shortcut=shortcut)


# ---------------- pure-JAX reference (for correctness check) ----------------

def csp_bottleneck_ref(x_nchw, p):
    x = jnp.transpose(x_nchw, (0, 2, 3, 1))

    def conv1x1(h, w, b):
        return jnp.einsum('bhwc,co->bhwo', h, w) + b.reshape(1, 1, 1, -1)

    o = jax.nn.relu(conv1x1(x, p['w1'], p['b1']))
    o = lax.conv_general_dilated(o, p['w2'], (1, 1), 'SAME',
                                 dimension_numbers=('NHWC', 'HWIO', 'NHWC'))
    o = jax.nn.relu(o + p['b2'].reshape(1, 1, 1, -1))
    o = conv1x1(o, p['w3'], p['b3'])
    sc = x if p['shortcut'] else conv1x1(x, p['wsc'], p['bsc'])
    out = jax.nn.relu(o + sc)
    return jnp.transpose(out, (0, 3, 1, 2))


if __name__ == "__main__":
    key = jax.random.PRNGKey(0)
    k_x, k_x2, k_p1, k_p2 = jax.random.split(key, 4)

    B, C_in, H, W = 2, 4, 16, 16
    x = jax.random.normal(k_x, (B, C_in, H, W), jnp.float32)

    # 1) identity shortcut, 2 row tiles -> exercises the halo exchange.
    p1 = init_params(k_p1, C_in, C_in, shortcut=True)
    out1 = jax.block_until_ready(csp_bottleneck_pallas(x, p1, row_tile=8))
    ref1 = csp_bottleneck_ref(x, p1)
    assert out1.shape == (B, C_in, H, W)
    assert bool(jnp.allclose(out1, ref1, atol=1e-4, rtol=1e-4)), \
        "shortcut=True mismatch vs reference"

    # 2) conv shortcut (in != out channels), 4 row tiles.
    C_out = 8
    p2 = init_params(k_p2, C_in, C_out, shortcut=False)
    out2 = jax.block_until_ready(csp_bottleneck_pallas(x, p2, row_tile=4))
    ref2 = csp_bottleneck_ref(x, p2)
    assert out2.shape == (B, C_out, H, W)
    assert bool(jnp.allclose(out2, ref2, atol=1e-4, rtol=1e-4)), \
        "shortcut=False mismatch vs reference"

    # 3) bf16 MXU-operand path (all generations), bf16 output, f32 accumulation.
    out3 = jax.block_until_ready(
        csp_bottleneck_pallas(x, p1, row_tile=8, use_bf16=True))
    assert bool(jnp.allclose(out3.astype(jnp.float32), ref1,
                             atol=5e-2, rtol=5e-2)), \
        "bf16 path mismatch vs reference"

    # 4) ragged H / unaligned W: pad + in-kernel row/col masking path.
    x2 = jax.random.normal(k_x2, (B, C_in, 10, 12), jnp.float32)
    out4 = jax.block_until_ready(csp_bottleneck_pallas(x2, p1, row_tile=4))
    ref4 = csp_bottleneck_ref(x2, p1)
    assert out4.shape == (B, C_in, 10, 12)
    assert bool(jnp.allclose(out4, ref4, atol=1e-4, rtol=1e-4)), \
        "ragged/padded shape mismatch vs reference"

    # 5) automatic (generation-aware) row-tile / VMEM-limit selection.
    out5 = jax.block_until_ready(csp_bottleneck_pallas(x, p1))
    assert bool(jnp.allclose(out5, ref1, atol=1e-4, rtol=1e-4)), \
        "auto-tile mismatch vs reference"

    print("KERNEL_OK")
</pallas_src>

<mosaic_0001>
module attributes {stable_mosaic.version = 11 : i64} {
  func.func @kernel(%arg0: i32, %arg1: i32, %arg2: memref<1x8x16x4xf32, #tpu.memory_space<vmem>>, %arg3: memref<1x1x16x4xf32, #tpu.memory_space<vmem>>, %arg4: memref<1x1x16x4xf32, #tpu.memory_space<vmem>>, %arg5: memref<4x4xf32, #tpu.memory_space<vmem>>, %arg6: memref<1x4xf32, #tpu.memory_space<vmem>>, %arg7: memref<9x4x4xf32, #tpu.memory_space<vmem>>, %arg8: memref<1x4xf32, #tpu.memory_space<vmem>>, %arg9: memref<4x4xf32, #tpu.memory_space<vmem>>, %arg10: memref<1x4xf32, #tpu.memory_space<vmem>>, %arg11: memref<1x8x16x4xf32, #tpu.memory_space<vmem>>) attributes {dimension_semantics = [#tpu.dimension_semantics<parallel>, #tpu.dimension_semantics<parallel>], iteration_bounds = array<i64: 2, 2>, scalar_prefetch = 0 : i64, scratch_operands = 0 : i64, tpu.core_type = #tpu.core_type<tc>, window_params = [{transform_indices = @transform_0, window_bounds = array<i64: 1, 8, 16, 4>}, {transform_indices = @transform_1, window_bounds = array<i64: 1, 1, 16, 4>}, {transform_indices = @transform_2, window_bounds = array<i64: 1, 1, 16, 4>}, {pipeline_mode = #tpu.pipeline_mode<synchronous>, transform_indices = @transform_3, window_bounds = array<i64: 4, 4>}, {pipeline_mode = #tpu.pipeline_mode<synchronous>, transform_indices = @transform_4, window_bounds = array<i64: 1, 4>}, {pipeline_mode = #tpu.pipeline_mode<synchronous>, transform_indices = @transform_5, window_bounds = array<i64: 9, 4, 4>}, {pipeline_mode = #tpu.pipeline_mode<synchronous>, transform_indices = @transform_6, window_bounds = array<i64: 1, 4>}, {pipeline_mode = #tpu.pipeline_mode<synchronous>, transform_indices = @transform_7, window_bounds = array<i64: 4, 4>}, {pipeline_mode = #tpu.pipeline_mode<synchronous>, transform_indices = @transform_8, window_bounds = array<i64: 1, 4>}, {transform_indices = @transform_9, window_bounds = array<i64: 1, 8, 16, 4>}]} {
    %c0 = arith.constant 0 : index
    %c0_0 = arith.constant 0 : index
    %0 = vector.load %arg5[%c0, %c0_0] : memref<4x4xf32, #tpu.memory_space<vmem>>, vector<4x4xf32>
    %c0_1 = arith.constant 0 : index
    %c0_2 = arith.constant 0 : index
    %1 = vector.load %arg6[%c0_1, %c0_2] : memref<1x4xf32, #tpu.memory_space<vmem>>, vector<1x4xf32>
    %c0_3 = arith.constant 0 : index
    %c0_4 = arith.constant 0 : index
    %c0_5 = arith.constant 0 : index
    %c0_6 = arith.constant 0 : index
    %2 = vector.load %arg2[%c0_3, %c0_4, %c0_5, %c0_6] : memref<1x8x16x4xf32, #tpu.memory_space<vmem>>, vector<1x8x16x4xf32>
    %3 = vector.shape_cast %2 : vector<1x8x16x4xf32> to vector<8x16x4xf32>
    %4 = vector.shape_cast %3 : vector<8x16x4xf32> to vector<128x4xf32>
    %cst = arith.constant dense<0.000000e+00> : vector<128x4xf32>
    %5 = tpu.matmul %4, %0, %cst {dimension_numbers = #tpu.dot_dimension_numbers<[1], [0], [0], [1], [0, 0, 1, 1], [], []>} : vector<128x4xf32>, vector<4x4xf32>, vector<128x4xf32> -> vector<128x4xf32>
    %6 = vector.broadcast %1 : vector<1x4xf32> to vector<128x4xf32>
    %7 = arith.addf %5, %6 : vector<128x4xf32>
    %cst_7 = arith.constant 0.000000e+00 : f32
    %8 = vector.broadcast %cst_7 : f32 to vector<128x4xf32>
    %9 = arith.maximumf %7, %8 : vector<128x4xf32>
    %c0_i32 = arith.constant 0 : i32
    %10 = arith.cmpi sgt, %arg1, %c0_i32 : i32
    %11 = arith.extui %10 : i1 to i32
    %12 = arith.sitofp %11 : i32 to f32
    %c1_i32 = arith.constant 1 : i32
    %13 = arith.addi %arg1, %c1_i32 : i32
    %c8_i32 = arith.constant 8 : i32
    %14 = arith.muli %13, %c8_i32 : i32
    %c16_i32 = arith.constant 16 : i32
    %15 = arith.cmpi slt, %14, %c16_i32 : i32
    %16 = arith.extui %15 : i1 to i32
    %17 = arith.sitofp %16 : i32 to f32
    %c0_8 = arith.constant 0 : index
    %c0_9 = arith.constant 0 : index
    %c0_10 = arith.constant 0 : index
    %c0_11 = arith.constant 0 : index
    %18 = vector.load %arg3[%c0_8, %c0_9, %c0_10, %c0_11] : memref<1x1x16x4xf32, #tpu.memory_space<vmem>>, vector<1x1x16x4xf32>
    %19 = vector.shape_cast %18 : vector<1x1x16x4xf32> to vector<16x4xf32>
    %cst_12 = arith.constant dense<0.000000e+00> : vector<16x4xf32>
    %20 = tpu.matmul %19, %0, %cst_12 {dimension_numbers = #tpu.dot_dimension_numbers<[1], [0], [0], [1], [0, 0, 1, 1], [], []>} : vector<16x4xf32>, vector<4x4xf32>, vector<16x4xf32> -> vector<16x4xf32>
    %21 = vector.broadcast %1 : vector<1x4xf32> to vector<16x4xf32>
    %22 = arith.addf %20, %21 : vector<16x4xf32>
    %cst_13 = arith.constant 0.000000e+00 : f32
    %23 = vector.broadcast %cst_13 : f32 to vector<16x4xf32>
    %24 = arith.maximumf %22, %23 : vector<16x4xf32>
    %25 = vector.broadcast %12 : f32 to vector<16x4xf32>
    %26 = arith.mulf %24, %25 : vector<16x4xf32>
    %c0_14 = arith.constant 0 : index
    %c0_15 = arith.constant 0 : index
    %c0_16 = arith.constant 0 : index
    %c0_17 = arith.constant 0 : index
    %27 = vector.load %arg4[%c0_14, %c0_15, %c0_16, %c0_17] : memref<1x1x16x4xf32, #tpu.memory_space<vmem>>, vector<1x1x16x4xf32>
    %28 = vector.shape_cast %27 : vector<1x1x16x4xf32> to vector<16x4xf32>
    %cst_18 = arith.constant dense<0.000000e+00> : vector<16x4xf32>
    %29 = tpu.matmul %28, %0, %cst_18 {dimension_numbers = #tpu.dot_dimension_numbers<[1], [0], [0], [1], [0, 0, 1, 1], [], []>} : vector<16x4xf32>, vector<4x4xf32>, vector<16x4xf32> -> vector<16x4xf32>
    %30 = vector.broadcast %1 : vector<1x4xf32> to vector<16x4xf32>
    %31 = arith.addf %29, %30 : vector<16x4xf32>
    %cst_19 = arith.constant 0.000000e+00 : f32
    %32 = vector.broadcast %cst_19 : f32 to vector<16x4xf32>
    %33 = arith.maximumf %31, %32 : vector<16x4xf32>
    %34 = vector.broadcast %17 : f32 to vector<16x4xf32>
    %35 = arith.mulf %33, %34 : vector<16x4xf32>
    %cst_20 = arith.constant 0.000000e+00 : f32
    %36 = vector.broadcast %cst_20 : f32 to vector<1x4xf32>
    %37 = tpu.concatenate %36, %26, %9, %35, %36 in 0 : vector<1x4xf32>, vector<16x4xf32>, vector<128x4xf32>, vector<16x4xf32>, vector<1x4xf32> -> vector<162x4xf32>
    %38 = tpu.iota {dimensions = array<i32: 0>} : vector<160x1xi32>
    %c16_i32_21 = arith.constant 16 : i32
    %c0_i32_22 = arith.constant 0 : i32
    %39 = arith.cmpi eq, %c16_i32_21, %c0_i32_22 : i32
    %c1_i32_23 = arith.constant 1 : i32
    %40 = arith.select %39, %c1_i32_23, %c16_i32_21 : i32
    %41 = vector.broadcast %40 : i32 to vector<160x1xi32>
    %42 = arith.remsi %38, %41 : vector<160x1xi32>
    %c0_i32_24 = arith.constant 0 : i32
    %43 = vector.broadcast %c0_i32_24 : i32 to vector<160x1xi32>
    %44 = arith.cmpi ne, %42, %43 : vector<160x1xi32>
    %c0_i32_25 = arith.constant 0 : i32
    %45 = vector.broadcast %c0_i32_25 : i32 to vector<160x1xi32>
    %46 = arith.cmpi slt, %42, %45 : vector<160x1xi32>
    %c0_i32_26 = arith.constant 0 : i32
    %47 = arith.cmpi slt, %40, %c0_i32_26 : i32
    %48 = vector.broadcast %47 : i1 to vector<160x1xi1>
    %49 = vector.broadcast %48 : vector<160x1xi1> to vector<160x1xi1>
    %50 = arith.xori %46, %49 : vector<160x1xi1>
    %51 = arith.andi %50, %44 : vector<160x1xi1>
    %52 = vector.broadcast %40 : i32 to vector<160x1xi32>
    %53 = arith.addi %42, %52 : vector<160x1xi32>
    %54 = arith.select %51, %53, %42 : vector<160x1xi1>, vector<160x1xi32>
    %c1_i32_27 = arith.constant 1 : i32
    %55 = vector.broadcast %c1_i32_27 : i32 to vector<160x1xi32>
    %56 = arith.cmpi sge, %54, %55 : vector<160x1xi32>
    %c14_i32 = arith.constant 14 : i32
    %57 = vector.broadcast %c14_i32 : i32 to vector<160x1xi32>
    %58 = arith.cmpi sle, %54, %57 : vector<160x1xi32>
    %59 = vector.extract_strided_slice %37 {offsets = [0, 0], sizes = [160, 4], strides = [1, 1]} : vector<162x4xf32> to vector<160x4xf32>
    %60 = vector.extract_strided_slice %37 {offsets = [1, 0], sizes = [160, 4], strides = [1, 1]} : vector<162x4xf32> to vector<160x4xf32>
    %61 = vector.extract_strided_slice %37 {offsets = [2, 0], sizes = [160, 4], strides = [1, 1]} : vector<162x4xf32> to vector<160x4xf32>
    %62 = arith.extui %56 : vector<160x1xi1> to vector<160x1xi32>
    %63 = arith.sitofp %62 : vector<160x1xi32> to vector<160x1xf32>
    %64 = vector.broadcast %63 : vector<160x1xf32> to vector<160x4xf32>
    %65 = arith.mulf %59, %64 : vector<160x4xf32>
    %66 = arith.extui %58 : vector<160x1xi1> to vector<160x1xi32>
    %67 = arith.sitofp %66 : vector<160x1xi32> to vector<160x1xf32>
    %68 = vector.broadcast %67 : vector<160x1xf32> to vector<160x4xf32>
    %69 = arith.mulf %61, %68 : vector<160x4xf32>
    %70 = vector.extract_strided_slice %65 {offsets = [0, 0], sizes = [128, 4], strides = [1, 1]} : vector<160x4xf32> to vector<128x4xf32>
    %c0_28 = arith.constant 0 : index
    %c0_29 = arith.constant 0 : index
    %c0_30 = arith.constant 0 : index
    %71 = vector.load %arg7[%c0_28, %c0_29, %c0_30] : memref<9x4x4xf32, #tpu.memory_space<vmem>>, vector<1x4x4xf32>
    %72 = vector.shape_cast %71 : vector<1x4x4xf32> to vector<4x4xf32>
    %cst_31 = arith.constant dense<0.000000e+00> : vector<128x4xf32>
    %73 = tpu.matmul %70, %72, %cst_31 {dimension_numbers = #tpu.dot_dimension_numbers<[1], [0], [0], [1], [0, 0, 1, 1], [], []>} : vector<128x4xf32>, vector<4x4xf32>, vector<128x4xf32> -> vector<128x4xf32>
    %74 = vector.extract_strided_slice %60 {offsets = [0, 0], sizes = [128, 4], strides = [1, 1]} : vector<160x4xf32> to vector<128x4xf32>
    %c1 = arith.constant 1 : index
    %c0_32 = arith.constant 0 : index
    %c0_33 = arith.constant 0 : index
    %75 = vector.load %arg7[%c1, %c0_32, %c0_33] : memref<9x4x4xf32, #tpu.memory_space<vmem>>, vector<1x4x4xf32>
    %76 = vector.shape_cast %75 : vector<1x4x4xf32> to vector<4x4xf32>
    %cst_34 = arith.constant dense<0.000000e+00> : vector<128x4xf32>
    %77 = tpu.matmul %74, %76, %cst_34 {dimension_numbers = #tpu.dot_dimension_numbers<[1], [0], [0], [1], [0, 0, 1, 1], [], []>} : vector<128x4xf32>, vector<4x4xf32>, vector<128x4xf32> -> vector<128x4xf32>
    %78 = arith.addf %73, %77 : vector<128x4xf32>
    %79 = vector.extract_strided_slice %69 {offsets = [0, 0], sizes = [128, 4], strides = [1, 1]} : vector<160x4xf32> to vector<128x4xf32>
    %c2 = arith.constant 2 : index
    %c0_35 = arith.constant 0 : index
    %c0_36 = arith.constant 0 : index
    %80 = vector.load %arg7[%c2, %c0_35, %c0_36] : memref<9x4x4xf32, #tpu.memory_space<vmem>>, vector<1x4x4xf32>
    %81 = vector.shape_cast %80 : vector<1x4x4xf32> to vector<4x4xf32>
    %cst_37 = arith.constant dense<0.000000e+00> : vector<128x4xf32>
    %82 = tpu.matmul %79, %81, %cst_37 {dimension_numbers = #tpu.dot_dimension_numbers<[1], [0], [0], [1], [0, 0, 1, 1], [], []>} : vector<128x4xf32>, vector<4x4xf32>, vector<128x4xf32> -> vector<128x4xf32>
    %83 = arith.addf %78, %82 : vector<128x4xf32>
    %84 = vector.extract_strided_slice %65 {offsets = [16, 0], sizes = [128, 4], strides = [1, 1]} : vector<160x4xf32> to vector<128x4xf32>
    %c3 = arith.constant 3 : index
    %c0_38 = arith.constant 0 : index
    %c0_39 = arith.constant 0 : index
    %85 = vector.load %arg7[%c3, %c0_38, %c0_39] : memref<9x4x4xf32, #tpu.memory_space<vmem>>, vector<1x4x4xf32>
    %86 = vector.shape_cast %85 : vector<1x4x4xf32> to vector<4x4xf32>
    %cst_40 = arith.constant dense<0.000000e+00> : vector<128x4xf32>
    %87 = tpu.matmul %84, %86, %cst_40 {dimension_numbers = #tpu.dot_dimension_numbers<[1], [0], [0], [1], [0, 0, 1, 1], [], []>} : vector<128x4xf32>, vector<4x4xf32>, vector<128x4xf32> -> vector<128x4xf32>
    %88 = arith.addf %83, %87 : vector<128x4xf32>
    %89 = vector.extract_strided_slice %60 {offsets = [16, 0], sizes = [128, 4], strides = [1, 1]} : vector<160x4xf32> to vector<128x4xf32>
    %c4 = arith.constant 4 : index
    %c0_41 = arith.constant 0 : index
    %c0_42 = arith.constant 0 : index
    %90 = vector.load %arg7[%c4, %c0_41, %c0_42] : memref<9x4x4xf32, #tpu.memory_space<vmem>>, vector<1x4x4xf32>
    %91 = vector.shape_cast %90 : vector<1x4x4xf32> to vector<4x4xf32>
    %cst_43 = arith.constant dense<0.000000e+00> : vector<128x4xf32>
    %92 = tpu.matmul %89, %91, %cst_43 {dimension_numbers = #tpu.dot_dimension_numbers<[1], [0], [0], [1], [0, 0, 1, 1], [], []>} : vector<128x4xf32>, vector<4x4xf32>, vector<128x4xf32> -> vector<128x4xf32>
    %93 = arith.addf %88, %92 : vector<128x4xf32>
    %94 = vector.extract_strided_slice %69 {offsets = [16, 0], sizes = [128, 4], strides = [1, 1]} : vector<160x4xf32> to vector<128x4xf32>
    %c5 = arith.constant 5 : index
    %c0_44 = arith.constant 0 : index
    %c0_45 = arith.constant 0 : index
    %95 = vector.load %arg7[%c5, %c0_44, %c0_45] : memref<9x4x4xf32, #tpu.memory_space<vmem>>, vector<1x4x4xf32>
    %96 = vector.shape_cast %95 : vector<1x4x4xf32> to vector<4x4xf32>
    %cst_46 = arith.constant dense<0.000000e+00> : vector<128x4xf32>
    %97 = tpu.matmul %94, %96, %cst_46 {dimension_numbers = #tpu.dot_dimension_numbers<[1], [0], [0], [1], [0, 0, 1, 1], [], []>} : vector<128x4xf32>, vector<4x4xf32>, vector<128x4xf32> -> vector<128x4xf32>
    %98 = arith.addf %93, %97 : vector<128x4xf32>
    %99 = vector.extract_strided_slice %65 {offsets = [32, 0], sizes = [128, 4], strides = [1, 1]} : vector<160x4xf32> to vector<128x4xf32>
    %c6 = arith.constant 6 : index
    %c0_47 = arith.constant 0 : index
    %c0_48 = arith.constant 0 : index
    %100 = vector.load %arg7[%c6, %c0_47, %c0_48] : memref<9x4x4xf32, #tpu.memory_space<vmem>>, vector<1x4x4xf32>
    %101 = vector.shape_cast %100 : vector<1x4x4xf32> to vector<4x4xf32>
    %cst_49 = arith.constant dense<0.000000e+00> : vector<128x4xf32>
    %102 = tpu.matmul %99, %101, %cst_49 {dimension_numbers = #tpu.dot_dimension_numbers<[1], [0], [0], [1], [0, 0, 1, 1], [], []>} : vector<128x4xf32>, vector<4x4xf32>, vector<128x4xf32> -> vector<128x4xf32>
    %103 = arith.addf %98, %102 : vector<128x4xf32>
    %104 = vector.extract_strided_slice %60 {offsets = [32, 0], sizes = [128, 4], strides = [1, 1]} : vector<160x4xf32> to vector<128x4xf32>
    %c7 = arith.constant 7 : index
    %c0_50 = arith.constant 0 : index
    %c0_51 = arith.constant 0 : index
    %105 = vector.load %arg7[%c7, %c0_50, %c0_51] : memref<9x4x4xf32, #tpu.memory_space<vmem>>, vector<1x4x4xf32>
    %106 = vector.shape_cast %105 : vector<1x4x4xf32> to vector<4x4xf32>
    %cst_52 = arith.constant dense<0.000000e+00> : vector<128x4xf32>
    %107 = tpu.matmul %104, %106, %cst_52 {dimension_numbers = #tpu.dot_dimension_numbers<[1], [0], [0], [1], [0, 0, 1, 1], [], []>} : vector<128x4xf32>, vector<4x4xf32>, vector<128x4xf32> -> vector<128x4xf32>
    %108 = arith.addf %103, %107 : vector<128x4xf32>
    %109 = vector.extract_strided_slice %69 {offsets = [32, 0], sizes = [128, 4], strides = [1, 1]} : vector<160x4xf32> to vector<128x4xf32>
    %c8 = arith.constant 8 : index
    %c0_53 = arith.constant 0 : index
    %c0_54 = arith.constant 0 : index
    %110 = vector.load %arg7[%c8, %c0_53, %c0_54] : memref<9x4x4xf32, #tpu.memory_space<vmem>>, vector<1x4x4xf32>
    %111 = vector.shape_cast %110 : vector<1x4x4xf32> to vector<4x4xf32>
    %cst_55 = arith.constant dense<0.000000e+00> : vector<128x4xf32>
    %112 = tpu.matmul %109, %111, %cst_55 {dimension_numbers = #tpu.dot_dimension_numbers<[1], [0], [0], [1], [0, 0, 1, 1], [], []>} : vector<128x4xf32>, vector<4x4xf32>, vector<128x4xf32> -> vector<128x4xf32>
    %113 = arith.addf %108, %112 : vector<128x4xf32>
    %c0_56 = arith.constant 0 : index
    %c0_57 = arith.constant 0 : index
    %114 = vector.load %arg8[%c0_56, %c0_57] : memref<1x4xf32, #tpu.memory_space<vmem>>, vector<1x4xf32>
    %115 = vector.broadcast %114 : vector<1x4xf32> to vector<128x4xf32>
    %116 = arith.addf %113, %115 : vector<128x4xf32>
    %cst_58 = arith.constant 0.000000e+00 : f32
    %117 = vector.broadcast %cst_58 : f32 to vector<128x4xf32>
    %118 = arith.maximumf %116, %117 : vector<128x4xf32>
    %c0_59 = arith.constant 0 : index
    %c0_60 = arith.constant 0 : index
    %119 = vector.load %arg9[%c0_59, %c0_60] : memref<4x4xf32, #tpu.memory_space<vmem>>, vector<4x4xf32>
    %cst_61 = arith.constant dense<0.000000e+00> : vector<128x4xf32>
    %120 = tpu.matmul %118, %119, %cst_61 {dimension_numbers = #tpu.dot_dimension_numbers<[1], [0], [0], [1], [0, 0, 1, 1], [], []>} : vector<128x4xf32>, vector<4x4xf32>, vector<128x4xf32> -> vector<128x4xf32>
    %c0_62 = arith.constant 0 : index
    %c0_63 = arith.constant 0 : index
    %121 = vector.load %arg10[%c0_62, %c0_63] : memref<1x4xf32, #tpu.memory_space<vmem>>, vector<1x4xf32>
    %122 = vector.broadcast %121 : vector<1x4xf32> to vector<128x4xf32>
    %123 = arith.addf %120, %122 : vector<128x4xf32>
    %124 = arith.addf %123, %4 : vector<128x4xf32>
    %cst_64 = arith.constant 0.000000e+00 : f32
    %125 = vector.broadcast %cst_64 : f32 to vector<128x4xf32>
    %126 = arith.maximumf %124, %125 : vector<128x4xf32>
    %127 = vector.shape_cast %126 : vector<128x4xf32> to vector<1x8x16x4xf32>
    %c0_65 = arith.constant 0 : index
    %c0_66 = arith.constant 0 : index
    %c0_67 = arith.constant 0 : index
    %c0_68 = arith.constant 0 : index
    %128 = vector.load %arg11[%c0_65, %c0_66, %c0_67, %c0_68] : memref<1x8x16x4xf32, #tpu.memory_space<vmem>>, vector<1x8x16x4xf32>
    tpu.vector_store %arg11[%c0_65, %c0_66, %c0_67, %c0_68], %127 {strides = array<i32>} : memref<1x8x16x4xf32, #tpu.memory_space<vmem>>, vector<1x8x16x4xf32>,
    return
  }
  func.func @transform_0(%arg0: i32, %arg1: i32) -> (i32, i32, i32, i32) {
    %c0_i32 = arith.constant 0 : i32
    %c0_i32_0 = arith.constant 0 : i32
    %c0_i32_1 = arith.constant 0 : i32
    return %arg0, %arg1, %c0_i32, %c0_i32_0 : i32, i32, i32, i32
  }
  func.func @transform_1(%arg0: i32, %arg1: i32) -> (i32, i32, i32, i32) {
    %c8_i32 = arith.constant 8 : i32
    %0 = arith.muli %arg1, %c8_i32 : i32
    %c1_i32 = arith.constant 1 : i32
    %1 = arith.subi %0, %c1_i32 : i32
    %c0_i32 = arith.constant 0 : i32
    %2 = arith.maxsi %1, %c0_i32 : i32
    %c0_i32_0 = arith.constant 0 : i32
    %c0_i32_1 = arith.constant 0 : i32
    %c0_i32_2 = arith.constant 0 : i32
    return %arg0, %2, %c0_i32_0, %c0_i32_1 : i32, i32, i32, i32
  }
  func.func @transform_2(%arg0: i32, %arg1: i32) -> (i32, i32, i32, i32) {
    %c8_i32 = arith.constant 8 : i32
    %0 = arith.muli %arg1, %c8_i32 : i32
    %c8_i32_0 = arith.constant 8 : i32
    %1 = arith.addi %0, %c8_i32_0 : i32
    %c15_i32 = arith.constant 15 : i32
    %2 = arith.minsi %1, %c15_i32 : i32
    %c0_i32 = arith.constant 0 : i32
    %c0_i32_1 = arith.constant 0 : i32
    %c0_i32_2 = arith.constant 0 : i32
    return %arg0, %2, %c0_i32, %c0_i32_1 : i32, i32, i32, i32
  }
  func.func @transform_3(%arg0: i32, %arg1: i32) -> (i32, i32) {
    %c0_i32 = arith.constant 0 : i32
    %c0_i32_0 = arith.constant 0 : i32
    %c0_i32_1 = arith.constant 0 : i32
    return %c0_i32, %c0_i32_0 : i32, i32
  }
  func.func @transform_4(%arg0: i32, %arg1: i32) -> (i32, i32) {
    %c0_i32 = arith.constant 0 : i32
    %c0_i32_0 = arith.constant 0 : i32
    %c0_i32_1 = arith.constant 0 : i32
    return %c0_i32, %c0_i32_0 : i32, i32
  }
  func.func @transform_5(%arg0: i32, %arg1: i32) -> (i32, i32, i32) {
    %c0_i32 = arith.constant 0 : i32
    %c0_i32_0 = arith.constant 0 : i32
    %c0_i32_1 = arith.constant 0 : i32
    %c0_i32_2 = arith.constant 0 : i32
    return %c0_i32, %c0_i32_0, %c0_i32_1 : i32, i32, i32
  }
  func.func @transform_6(%arg0: i32, %arg1: i32) -> (i32, i32) {
    %c0_i32 = arith.constant 0 : i32
    %c0_i32_0 = arith.constant 0 : i32
    %c0_i32_1 = arith.constant 0 : i32
    return %c0_i32, %c0_i32_0 : i32, i32
  }
  func.func @transform_7(%arg0: i32, %arg1: i32) -> (i32, i32) {
    %c0_i32 = arith.constant 0 : i32
    %c0_i32_0 = arith.constant 0 : i32
    %c0_i32_1 = arith.constant 0 : i32
    return %c0_i32, %c0_i32_0 : i32, i32
  }
  func.func @transform_8(%arg0: i32, %arg1: i32) -> (i32, i32) {
    %c0_i32 = arith.constant 0 : i32
    %c0_i32_0 = arith.constant 0 : i32
    %c0_i32_1 = arith.constant 0 : i32
    return %c0_i32, %c0_i32_0 : i32, i32
  }
  func.func @transform_9(%arg0: i32, %arg1: i32) -> (i32, i32, i32, i32) {
    %c0_i32 = arith.constant 0 : i32
    %c0_i32_0 = arith.constant 0 : i32
    %c0_i32_1 = arith.constant 0 : i32
    return %arg0, %arg1, %c0_i32, %c0_i32_0 : i32, i32, i32, i32
  }
}

</mosaic_0001>

<bundles_post_ra>
// kernel: tpu_custom_call.1
= control target key start
LH: loop header
LB: loop body
LE: loop exit
PB: predicated region body
PF: predicated region fallthrough
CT: control target
= control target key end

     0   :  { %s3080_s30 = smov 0   ;;  %s3082_s10 = smov 0   ;;  %s4110_s0 = inlined_call_operand.vmem [shape: f32[2,16,16,4], index: 0, kind: input, shape index: {}]   ;;  %s4111_s1 = inlined_call_operand.vmem [shape: f32[2,16,16,4], index: 1, kind: input, shape index: {}]   ;;  %s4112_s2 = inlined_call_operand.vmem [shape: f32[2,16,16,4], index: 2, kind: input, shape index: {}]   ;;  %s4113_s3 = inlined_call_operand.vmem [shape: f32[4,4], index: 3, kind: input, shape index: {}]   ;;  %s4114_s4 = inlined_call_operand.vmem [shape: f32[1,4], index: 4, kind: input, shape index: {}]   ;;  %s4115_s5 = inlined_call_operand.vmem [shape: f32[9,4,4], index: 5, kind: input, shape index: {}]   ;;  %s4116_s6 = inlined_call_operand.vmem [shape: f32[1,4], index: 6, kind: input, shape index: {}]   ;;  %s4117_s7 = inlined_call_operand.vmem [shape: f32[4,4], index: 7, kind: input, shape index: {}]   ;;  %s4118_s8 = inlined_call_operand.vmem [shape: f32[1,4], index: 8, kind: input, shape index: {}]   ;;  %s4119_s9 = inlined_call_operand.vmem [shape: f32[2,16,16,4], index: 9, kind: output, shape index: {}]  }
   0x1   :  { %s3084_s11 = smov 0   ;;  %s3086_s12 = smov 0  }
   0x2   :  { %s3088_s13 = smov 0  }
   0x3 LB: > { %s28_s14 = sadd.s32 1, %s3018_s11  ;;  %s31_s15 = sadd.s32 1, %s3022_s12  ;;  %s3026_s13 = sphi %s3088_s13, %s19_s13   ;;  %s3022_s12 = sphi %s3086_s12, %s4153_s12   ;;  %s3018_s11 = sphi %s3084_s11, %s4152_s11   ;;  %s3014_s10 = sphi %s3082_s10, %s4151_s10   ;;  %s3010_s30 = sphi %s3080_s30, %s4150_s30  }
   0x4   : > { %p29_p0 = scmp.ge.s32.totalorder %s28_s14, 2  ;;  %p2670_p1 = scmp.ge.s32.totalorder %s3026_s13, 1 }
   0x5   : > { %p373_p2 = scmp.lt.s32.totalorder %s3026_s13, 5 }
   0x6   : > { %s4155_s14 = smov (%p29_p0, %s28_s14), 0  ;;  %s4157_s15 = smov (!%p29_p0, %s31_s15), %s3022_s12 }
   0x7   : > { %p374_p3 = pnand %p2670_p1, %p373_p2  ;;  %p33_p4 = scmp.ge.s32.totalorder %s4157_s15, 2 }
   0x9   : > { %s4159_s15 = smov (%p33_p4, %s4157_s15), 0  ;;  %377 = sbr.rel (%p374_p3) target bundleno = 799 (0x31f), region = 56 }
   0xe   : > { %v501_v0 = vld [vmem:[%s4113_s3] sm:$0xf]  ;;  %vm571_vm0 = vcmask 1043456   ;;  %s3116_s18 = sshll.u32 %s3010_s30, 3  ;;  %p446_p5 = scmp.lt.s32.totalorder %s3014_s10, 1  ;;  %vm522_vm1 = vcmask 31744   ;;  %v821_v24 = vlaneseq }
   0xf   : > { %2696 = vmatpush.msk.msra.mxu0 %vm571_vm0, %v501_v0  ;;  %p448_p6 = scmp.lt.s32.totalorder %s3116_s18, 15  ;;  %2714 = vmatpush.msk.msra.mxu1 %vm571_vm0, %v501_v0  ;;  %s2676_s19 = sadd.s32 4294967295, %s3116_s18  ;;  %v1324_v20 = vld [vmem:[%s4115_s5] sm:$0xf]  ;;  %v2793_v22 = vld [vmem:[%s4115_s5 + $0xc] sm:$0xf] }
  0x10   : > { %s4161_s10 = smov (!%p446_p5, %s3014_s10), 1  ;;  %2924 = vmatpush.msk.msra.mxu2 %vm571_vm0, %v501_v0  ;;  %p458_p7 = scmp.gt.s32.totalorder %s2676_s19, 0  ;;  %v2740_v23 = vld [vmem:[%s4115_s5 + $0x4] sm:$0xf]  ;;  %v3202_v25 = vshrl.u32 %v821_v24, 7  ;;  %vm738_vm5 = vcmask 1040384  }
  0x11   : > { %s449_s20 = scalar_select %p448_p6, %s3116_s18, 15  ;;  %2758 = vmatpush.msk.msrb.mxu1 %vm571_vm0, %v1324_v20  ;;  %2794 = vmatpush.msk.msrb.mxu0 %vm571_vm0, %v2793_v22  ;;  %v2811_v26 = vld [vmem:[%s4115_s5 + $0x10] sm:$0xf]  ;;  %v3213_v30 = vld [vmem:[%s4114_s4] ss:$0 sm:$0xff]  ;;  %v4120_v45 = vmov 0.0  }
  0x12   : > { %2717 = vmatpush.msk.msrb.mxu2 %vm571_vm0, %v501_v0  ;;  %s3125_s21 = sshll.u32 %s4161_s10, 5  ;;  %p2677_p8 = scmp.lt.s32.totalorder %s2676_s19, 15  ;;  %2925 = vmatpush.msk.msra.mxu3 %vm571_vm0, %v2740_v23  ;;  %v825_v28 = vadd.s32 24, %v3202_v25  ;;  %v823_v29 = vadd.s32 8, %v3202_v25  ;;  %v846_v34 = vand.u32 15, %v3202_v25  ;;  %v824_v41 = vadd.s32 16, %v3202_v25 }
  0x13   : > { %s2672_s22 = sshll.u32 %s449_s20, 1  ;;  %s4163_s19 = smov (!%p458_p7, %s2676_s19), 0  ;;  %v3029_v51 = vmov 1.0   ;;  %vm1242_vm6 = vcmask 1041408   ;;  %vm1329_vm8 = vcmask 1046528   ;;  %vm1598_vm9 = vcmask 1045504  }
  0x14   : > { %s3128_s23 = sadd.s32 %s3125_s21, %s2672_s22  ;;  %s4165_s19 = smov (!%p2677_p8, %s4163_s19), 15  ;;  %2812 = vmatpush.msk.msrb.mxu3 %vm571_vm0, %v2811_v26  ;;  %v867_v31 = vand.u32 15, %v825_v28  ;;  %v853_v35 = vand.u32 15, %v823_v29  ;;  %vm1082_vm3 = vcmp.ge.s32.totalorder %v846_v34, 1  ;;  %v860_v50 = vand.u32 15, %v824_v41 }
  0x15   : > { %s2674_s24 = sshll.u32 %s3128_s23, 3  ;;  %s2682_s28 = sshll.u32 %s4165_s19, 1  ;;  %v2720_v48 = vsel %vm1082_vm3, 1.0, %v4120_v45  ;;  %v3223_v52 = vrot.slane %v3029_v51, 6  ;;  %v826_v28 = vadd.s32 32, %v3202_v25 }
  0x16   : > { %s3136_s27 = scalar_lea.vmem %s4110_s0, %s2674_s24  ;;  %s466_s29 = sadd.s32 %s2682_s28, %s3125_s21  ;;  %vm1105_vm2 = vcmp.le.s32.totalorder %v867_v31, 14  ;;  %vm1103_vm4 = vcmp.le.s32.totalorder %v853_v35, 14  ;;  %vm1084_vm7 = vcmp.ge.s32.totalorder %v860_v50, 1 }
  0x17   : > { %v503_v1 = vld [vmem:[%s3136_s27] sm:$0xff]  ;;  %s2684_s10 = sshll.u32 %s466_s29, 3  ;;  %v504_v2 = vld [vmem:[%s3136_s27 + $0x8] sm:$0xff]  ;;  %v505_v5 = vld [vmem:[%s3136_s27 + $0x10] sm:$0xff]  ;;  %s3157_s19 = sadd.s32 8, %s3116_s18  ;;  %v2731_v46 = vsel %vm1105_vm2, 1.0, %v4120_v45 }
  0x18   : > { %2697 = vmatmul.msk.f32.vlgmr.msra.gmra.mxu0 %vm522_vm1, %v503_v1  ;;  %s468_s20 = scalar_lea.vmem %s4111_s1, %s2684_s10  ;;  %v506_v6 = vld [vmem:[%s3136_s27 + $0x18] sm:$0xff]  ;;  %v507_v7 = vld [vmem:[%s3136_s27 + $0x20] sm:$0xff]  ;;  %v508_v8 = vld [vmem:[%s3136_s27 + $0x28] sm:$0xff]  ;;  %p475_p9 = scmp.lt.s32.totalorder %s3157_s19, 15  ;;  %v2730_v49 = vsel %vm1103_vm4, 1.0, %v4120_v45  ;;  %4130 = vst [vmem:[#allocation2_spill] sm:$0xff] %v3223_v52 }
  0x19   : > { %v664_v3 = vld [vmem:[%s468_s20] sm:$0xff]  ;;  %v665_v4 = vld [vmem:[%s468_s20 + $0x8] sm:$0xff]  ;;  %v509_v9 = vld [vmem:[%s3136_s27 + $0x30] sm:$0xff]  ;;  %p656_p10 = scmp.gt.s32.totalorder %s3010_s30, 0  ;;  %v1248_v59 = vrot.slane %v2731_v46, 6  ;;  %v1244_v62 = vrot.slane %v2730_v49, 6 }
  0x1a   : > { %2715 = vmatmul.msk.f32.vlgmr.msra.gmra.mxu1 %vm522_vm1, %v664_v3  ;;  %v516_v10 = vld [vmem:[%s3136_s27 + $0x68] sm:$0xff]  ;;  %s476_s22 = scalar_select %p475_p9, %s3157_s19, 15  ;;  %v510_v11 = vld [vmem:[%s3136_s27 + $0x38] sm:$0xff]  ;;  %v517_v12 = vld [vmem:[%s3136_s27 + $0x70] sm:$0xff] }
  0x1b   : > { %2710 = vmatmul.msk.f32.vlgmr.msra.gmra.mxu2 %vm522_vm1, %v516_v10  ;;  %v511_v13 = vld [vmem:[%s3136_s27 + $0x40] sm:$0xff]  ;;  %v518_v14 = vld [vmem:[%s3136_s27 + $0x78] sm:$0xff]  ;;  %v512_v15 = vld [vmem:[%s3136_s27 + $0x48] sm:$0xff]  ;;  %s657_s28 = scalar_select %p656_p10, 1, 0 }
  0x1c   : > { %s4167_s22 = smov (!%p475_p9, %s476_s22), 15  ;;  %v513_v17 = vld [vmem:[%s3136_s27 + $0x50] sm:$0xff]  ;;  %v514_v18 = vld [vmem:[%s3136_s27 + $0x58] sm:$0xff]  ;;  %v515_v19 = vld [vmem:[%s3136_s27 + $0x60] sm:$0xff]  ;;  %2741 = vmatpush.msk.msra.mxu2 %vm571_vm0, %v2740_v23  ;;  %p661_p11 = scmp.lt.s32.totalorder %s3157_s19, 16 }
  0x1d   : > { %s2689_s18 = sshll.u32 %s4167_s22, 1  ;;  %s658_s30 = scvt.s32.f32 %s657_s28 }
  0x1e   : > { %s483_s25 = sadd.s32 %s2689_s18, %s3125_s21 }
  0x1f   : > { %s2691_s26 = sshll.u32 %s483_s25, 3  ;;  %v697_v39 = vstv %s658_s30 }
  0x20   : > { %2698 = vmatmul.msk.f32.gmra.mxu0 %vm522_vm1, %v504_v2  ;;  %s485_s10 = scalar_lea.vmem %s4112_s2, %s2691_s26  ;;  %s4031_s26 = scalar_lea.vmem %s4119_s9, %s2674_s24 }
  0x21   : > { %v700_v16 = vld [vmem:[%s485_s10] sm:$0xff]  ;;  %v701_v21 = vld [vmem:[%s485_s10 + $0x8] sm:$0xff]  ;;  %s662_s19 = scalar_select %p661_p11, 1, 0 }
  0x22   : > { %2716 = vmatmul.msk.f32.gmra.mxu1 %vm522_vm1, %v665_v4  ;;  %v1249_v4 = vsel %vm1242_vm6, %v3223_v52, %v1248_v59 }
  0x23   : > { %2711 = vmatmul.msk.f32.gmra.mxu2 %vm522_vm1, %v517_v12  ;;  %s663_s10 = scvt.s32.f32 %s662_s19 }
  0x28   : > { %2699 = vmatmul.msk.f32.gmra.mxu0 %vm522_vm1, %v505_v5  ;;  %v1251_v5 = vsel %vm1242_vm6, %v1248_v59, %v3223_v52 }
  0x2b   : > { %2712 = vmatmul.msk.f32.gmra.mxu2 %vm522_vm1, %v518_v14 }
  0x30   : > { %2700 = vmatmul.msk.f32.gmra.mxu0 %vm522_vm1, %v506_v6  ;;  %v1245_v6 = vsel %vm1242_vm6, %v3223_v52, %v1244_v62 }
  0x33   : > { %2718 = vmatmul.msk.f32.vlgmr.msrb.gmra.mxu2 %vm522_vm1, %v700_v16 }
  0x34   : > { %2926 = vmatpush.msk.msrb.mxu2 %vm571_vm0, %v1324_v20 }
  0x38   : > { %2701 = vmatmul.msk.f32.gmra.mxu0 %vm522_vm1, %v507_v7  ;;  %v2721_v7 = vsel %vm1084_vm7, 1.0, %v4120_v45 }
  0x3b   : > { %2719 = vmatmul.msk.f32.gmra.mxu2 %vm522_vm1, %v701_v21 }
  0x40   : > { %2702 = vmatmul.msk.f32.gmra.mxu0 %vm522_vm1, %v508_v8  ;;  %v1247_v8 = vsel %vm1242_vm6, %v1244_v62, %v3223_v52  ;;  %v828_v62 = vadd.s32 48, %v3202_v25 }
  0x48   : > { %2703 = vmatmul.msk.f32.gmra.mxu0 %vm522_vm1, %v509_v9 }
  0x50   : > { %2704 = vmatmul.msk.f32.gmra.mxu0 %vm522_vm1, %v510_v11 }
  0x58   : > { %2705 = vmatmul.msk.f32.gmra.mxu0 %vm522_vm1, %v511_v13 }
  0x60   : > { %2706 = vmatmul.msk.f32.gmra.mxu0 %vm522_vm1, %v512_v15 }
  0x68   : > { %2707 = vmatmul.msk.f32.gmra.mxu0 %vm522_vm1, %v513_v17 }
  0x70   : > { %2708 = vmatmul.msk.f32.gmra.mxu0 %vm522_vm1, %v514_v18 }
  0x78   : > { %2709 = vmatmul.msk.f32.gmra.mxu0 %vm522_vm1, %v515_v19 }
  0x95   : > { %v592_v27 = vpop.f32.mrf.mxu0 }
  0x96   : > { %v593_v38 = vadd.f32 %v3213_v30, %v592_v27 }
  0x97   : > { %v689_v32 = vpop.f32.mrf.mxu1 }
  0x98   : > { %v690_v36 = vadd.f32 %v3213_v30, %v689_v32  ;;  %v640_v44 = vmax.f32 %v593_v38, 0.0 }
  0x9a   : > { %v695_v40 = vmax.f32 %v690_v36, 0.0  ;;  %v761_v60 = vrot.slane %v640_v44, 7 }
  0x9c   : > { %v698_v43 = vmul.f32 %v697_v39, %v695_v40 }
  0x9d   : > { %v595_v33 = vpop.f32.mrf.mxu0 }
  0x9e   : > { %v596_v37 = vadd.f32 %v3213_v30, %v595_v33  ;;  %v739_v47 = vrot.slane %v698_v43, 7 }
  0x9f   : > { %v692_v54 = vpop.f32.mrf.mxu1 }
  0xa0   : > { %v641_v42 = vmax.f32 %v596_v37, 0.0  ;;  %v817_v56 = vsel %vm738_vm5, 0.0, %v739_v47  ;;  %v693_v57 = vadd.f32 %v3213_v30, %v692_v54 }
  0xa1   : > { %v1162_v61 = vmul.f32 %v2720_v48, %v817_v56  ;;  %v1303_v9 = vmul.f32 %v3223_v52, %v817_v56  ;;  %v1330_v13 = vrot.slane %v817_v56, 1 }
  0xa2   : > { %v762_v53 = vrot.slane %v641_v42, 7  ;;  %v696_v63 = vmax.f32 %v693_v57, 0.0 }
  0xa3   : > { %2759 = vmatmul.msk.f32.vlgmr.msrb.gmra.mxu1 %vm522_vm1, %v1162_v61  ;;  %v1599_v26 = vrot.slane %v1303_v9, 2 }
  0xa4   : > { %v3229_v1 = vsel %vm738_vm5, %v761_v60, %v762_v53  ;;  %v699_v2 = vmul.f32 %v697_v39, %v696_v63  ;;  %v874_v39 = vand.u32 15, %v826_v28 }
  0xa5   : > { %v598_v55 = vpop.f32.mrf.mxu0  ;;  %v1335_v12 = vrot.slane %v3229_v1, 1  ;;  %v1306_v16 = vmul.f32 %v1249_v4, %v3229_v1  ;;  %v888_v4 = vand.u32 15, %v828_v62 }
  0xa6   : > { %v599_v58 = vadd.f32 %v3213_v30, %v598_v55  ;;  %v740_v10 = vrot.slane %v699_v2, 7  ;;  %vm1086_vm10 = vcmp.ge.s32.totalorder %v874_v39, 1 }
  0xa7   : > { %v1604_v33 = vrot.slane %v1306_v16, 2  ;;  %v2722_v54 = vsel %vm1086_vm10, 1.0, %v4120_v45  ;;  %vm1088_vm11 = vcmp.ge.s32.totalorder %v888_v4, 1  ;;  %v830_v16 = vadd.s32 64, %v3202_v25 }
  0xa8   : > { %v642_v0 = vmax.f32 %v599_v58, 0.0  ;;  %v818_v18 = vsel %vm738_vm5, %v740_v10, %v761_v60  ;;  %v741_v19 = vsel %vm738_vm5, %v739_v47, %v740_v10  ;;  %v2723_v9 = vsel %vm1088_vm11, 1.0, %v4120_v45 }
  0xa9   : > { %v1304_v21 = vmul.f32 %v1245_v6, %v741_v19  ;;  %v1331_v22 = vrot.slane %v741_v19, 1  ;;  %v1164_v23 = vmul.f32 %v2721_v7, %v818_v18  ;;  %v1305_v29 = vmul.f32 %v1247_v8, %v818_v18 }
  0xaa   : > { %v764_v3 = vrot.slane %v642_v0, 7  ;;  %v1333_v42 = vrot.slane %v818_v18, 1  ;;  %v2775_v18 = vld [vmem:[%s4115_s5 + $0x8] sm:$0xf] }
  0xab   : > { %2760 = vmatmul.msk.f32.gmra.mxu1 %vm522_vm1, %v741_v19  ;;  %v1600_v31 = vrot.slane %v1304_v21, 2  ;;  %2795 = vmatmul.msk.f32.vlgmr.msrb.gmra.mxu0 %vm522_vm1, %v1164_v23  ;;  %v1332_v32 = vsel %vm1329_vm8, %v1330_v13, %v1331_v22  ;;  %v1602_v36 = vrot.slane %v1305_v29, 2 }
  0xac   : > { %v765_v11 = vsel %vm738_vm5, %v762_v53, %v764_v3  ;;  %2742 = vmatmul.msk.f32.vlgmr.msra.gmra.mxu2 %vm522_vm1, %v1332_v32  ;;  %v1334_v50 = vsel %vm1329_vm8, %v1331_v22, %v1333_v42  ;;  %v3308_v61 = vsel %vm1329_vm8, %v1333_v42, %v1335_v12 }
  0xad   : > { %v601_v14 = vpop.f32.mrf.mxu0  ;;  %v1337_v15 = vrot.slane %v765_v11, 1  ;;  %v3245_v17 = vmul.f32 %v1251_v5, %v765_v11  ;;  %v3270_v40 = vsel %vm1598_vm9, %v1599_v26, %v1600_v31  ;;  %v3274_v44 = vsel %vm1598_vm9, %v1602_v36, %v1604_v33  ;;  %2776 = vmatpush.msk.msra.mxu2 %vm571_vm0, %v2775_v18  ;;  %v631_v18 = vpop.f32.mrf.mxu2 }
  0xae   : > { %v602_v20 = vadd.f32 %v3213_v30, %v601_v14  ;;  %v3277_v46 = vsel %vm1598_vm9, %v1600_v31, %v1602_v36  ;;  %v3296_v58 = vmul.f32 %v2722_v54, %v765_v11  ;;  %v2829_v31 = vld [vmem:[%s4115_s5 + $0x14] sm:$0xf] }
  0xaf   : > { %v3251_v24 = vsel %vm1329_vm8, %v1335_v12, %v1337_v15  ;;  %v1606_v34 = vrot.slane %v3245_v17, 2  ;;  %2830 = vmatpush.msk.msra.mxu1 %vm571_vm0, %v2829_v31 }
  0xb0   : > { %v643_v27 = vmax.f32 %v602_v20, 0.0  ;;  %2745 = vmatmul.msk.f32.vlgmr.msra.gmra.mxu3 %vm522_vm1, %v3251_v24 }
  0xb1   : > { %v3264_v37 = vsel %vm1598_vm9, %v1604_v33, %v1606_v34 }
  0xb2   : > { %v766_v35 = vrot.slane %v643_v27, 7 }
  0xb3   : > { %2761 = vmatmul.msk.f32.gmra.mxu1 %vm522_vm1, %v1164_v23  ;;  %2796 = vmatmul.msk.f32.gmra.mxu0 %vm522_vm1, %v3229_v1  ;;  %v902_v23 = vand.u32 15, %v830_v16 }
  0xb4   : > { %v3267_v38 = vsel %vm738_vm5, %v764_v3, %v766_v35  ;;  %2743 = vmatmul.msk.f32.gmra.mxu2 %vm522_vm1, %v1334_v50 }
  0xb5   : > { %v604_v41 = vpop.f32.mrf.mxu0  ;;  %v1339_v43 = vrot.slane %v3267_v38, 1  ;;  %vm1090_vm12 = vcmp.ge.s32.totalorder %v902_v23, 1  ;;  %v632_v23 = vadd.f32 %v3213_v30, %v631_v18 }
  0xb6   : > { %v605_v47 = vadd.f32 %v3213_v30, %v604_v41  ;;  %v2724_v33 = vsel %vm1090_vm12, 1.0, %v4120_v45 }
  0xb7   : > { %v3281_v48 = vsel %vm1329_vm8, %v1337_v15, %v1339_v43 }
  0xb8   : > { %v644_v49 = vmax.f32 %v605_v47, 0.0  ;;  %2746 = vmatmul.msk.f32.gmra.mxu3 %vm522_vm1, %v3281_v48 }
  0xba   : > { %v768_v51 = vrot.slane %v644_v49, 7  ;;  %v832_v49 = vadd.s32 80, %v3202_v25 }
  0xbb   : > { %2762 = vmatmul.msk.f32.gmra.mxu1 %vm522_vm1, %v3229_v1  ;;  %2797 = vmatmul.msk.f32.gmra.mxu0 %vm522_vm1, %v3296_v58 }
  0xbc   : > { %v3291_v53 = vsel %vm738_vm5, %v766_v35, %v768_v51  ;;  %2744 = vmatmul.msk.f32.gmra.mxu2 %vm522_vm1, %v3308_v61 }
  0xbd   : > { %v607_v55 = vpop.f32.mrf.mxu0  ;;  %v1341_v56 = vrot.slane %v3291_v53, 1  ;;  %v3334_v13 = vmul.f32 %v2723_v9, %v3291_v53 }
  0xbe   : > { %v608_v57 = vadd.f32 %v3213_v30, %v607_v55 }
  0xbf   : > { %v3299_v59 = vsel %vm1329_vm8, %v1339_v43, %v1341_v56  ;;  %v834_v43 = vadd.s32 96, %v3202_v25 }
  0xc0   : > { %v645_v60 = vmax.f32 %v608_v57, 0.0  ;;  %2747 = vmatmul.msk.f32.gmra.mxu3 %vm522_vm1, %v3299_v59  ;;  %v916_v57 = vand.u32 15, %v832_v49 }
  0xc2   : > { %v770_v63 = vrot.slane %v645_v60, 7  ;;  %vm1092_vm14 = vcmp.ge.s32.totalorder %v916_v57, 1 }
  0xc3   : > { %2763 = vmatmul.msk.f32.gmra.mxu1 %vm522_vm1, %v3296_v58  ;;  %2798 = vmatmul.msk.f32.gmra.mxu0 %vm522_vm1, %v3267_v38  ;;  %v2725_v4 = vsel %vm1092_vm14, 1.0, %v4120_v45 }
  0xc4   : > { %v3314_v0 = vsel %vm738_vm5, %v768_v51, %v770_v63  ;;  %v930_v51 = vand.u32 15, %v834_v43  ;;  %v2847_v43 = vld [vmem:[%s4115_s5 + $0x18] sm:$0xf] }
  0xc5   : > { %v610_v2 = vpop.f32.mrf.mxu0  ;;  %v1343_v3 = vrot.slane %v3314_v0, 1 }
  0xc6   : > { %v611_v1 = vadd.f32 %v3213_v30, %v610_v2  ;;  %vm1094_vm13 = vcmp.ge.s32.totalorder %v930_v51, 1  ;;  %v634_v51 = vpop.f32.mrf.mxu2 }
  0xc7   : > { %v3319_v5 = vsel %vm1329_vm8, %v1341_v56, %v1343_v3 }
  0xc8   : > { %v646_v6 = vmax.f32 %v611_v1, 0.0  ;;  %2748 = vmatmul.msk.f32.gmra.mxu3 %vm522_vm1, %v3319_v5 }
  0xca   : > { %v772_v7 = vrot.slane %v646_v6, 7 }
  0xcb   : > { %2764 = vmatmul.msk.f32.gmra.mxu1 %vm522_vm1, %v3267_v38  ;;  %2799 = vmatmul.msk.f32.gmra.mxu0 %vm522_vm1, %v3334_v13 }
  0xcc   : > { %v3328_v8 = vsel %vm738_vm5, %v770_v63, %v772_v7 }
  0xcd   : > { %v613_v10 = vpop.f32.mrf.mxu0  ;;  %v1345_v11 = vrot.slane %v3328_v8, 1  ;;  %v3375_v41 = vmul.f32 %v2724_v33, %v3328_v8 }
  0xce   : > { %v614_v12 = vadd.f32 %v3213_v30, %v613_v10 }
  0xcf   : > { %v3337_v14 = vsel %vm1329_vm8, %v1343_v3, %v1345_v11  ;;  %v2726_v3 = vsel %vm1094_vm13, 1.0, %v4120_v45 }
  0xd0   : > { %v647_v15 = vmax.f32 %v614_v12, 0.0  ;;  %2749 = vmatmul.msk.f32.gmra.mxu3 %vm522_vm1, %v3337_v14 }
  0xd2   : > { %v774_v19 = vrot.slane %v647_v15, 7  ;;  %v836_v15 = vadd.s32 112, %v3202_v25 }
  0xd3   : > { %2765 = vmatmul.msk.f32.gmra.mxu1 %vm522_vm1, %v3334_v13  ;;  %2800 = vmatmul.msk.f32.gmra.mxu0 %vm522_vm1, %v3314_v0 }
  0xd4   : > { %v3351_v20 = vsel %vm738_vm5, %v772_v7, %v774_v19 }
  0xd5   : > { %v616_v21 = vpop.f32.mrf.mxu0  ;;  %v1347_v22 = vrot.slane %v3351_v20, 1 }
  0xd6   : > { %v617_v26 = vadd.f32 %v3213_v30, %v616_v21  ;;  %v944_v21 = vand.u32 15, %v836_v15 }
  0xd7   : > { %v3356_v27 = vsel %vm1329_vm8, %v1345_v11, %v1347_v22 }
  0xd8   : > { %v648_v28 = vmax.f32 %v617_v26, 0.0  ;;  %2750 = vmatmul.msk.f32.gmra.mxu3 %vm522_vm1, %v3356_v27  ;;  %vm1096_vm15 = vcmp.ge.s32.totalorder %v944_v21, 1 }
  0xda   : > { %v776_v29 = vrot.slane %v648_v28, 7 }
  0xdb   : > { %2766 = vmatmul.msk.f32.gmra.mxu1 %vm522_vm1, %v3314_v0  ;;  %2801 = vmatmul.msk.f32.gmra.mxu0 %vm522_vm1, %v3375_v41 }
  0xdc   : > { %v3369_v32 = vsel %vm738_vm5, %v774_v19, %v776_v29 }
  0xdd   : > { %v619_v35 = vpop.f32.mrf.mxu0  ;;  %v1349_v36 = vrot.slane %v3369_v32, 1  ;;  %v3415_v11 = vmul.f32 %v2725_v4, %v3369_v32 }
  0xde   : > { %v620_v39 = vadd.f32 %v3213_v30, %v619_v35 }
  0xdf   : > { %v3378_v42 = vsel %vm1329_vm8, %v1347_v22, %v1349_v36  ;;  %v827_v22 = vadd.s32 40, %v3202_v25 }
  0xe0   : > { %v649_v47 = vmax.f32 %v620_v39, 0.0  ;;  %2751 = vmatmul.msk.f32.gmra.mxu3 %vm522_vm1, %v3378_v42 }
  0xe1   : > { %v881_v35 = vand.u32 15, %v827_v22 }
  0xe2   : > { %v778_v50 = vrot.slane %v649_v47, 7  ;;  %v2883_v47 = vld [vmem:[%s4115_s5 + $0x20] sm:$0xf] }
  0xe3   : > { %2767 = vmatmul.msk.f32.gmra.mxu1 %vm522_vm1, %v3375_v41  ;;  %2802 = vmatmul.msk.f32.gmra.mxu0 %vm522_vm1, %v3351_v20  ;;  %vm1107_vm2 = vcmp.le.s32.totalorder %v881_v35, 14 }
  0xe4   : > { %v3389_v54 = vsel %vm738_vm5, %v776_v29, %v778_v50  ;;  %2884 = vmatpush.msk.msra.mxu3 %vm571_vm0, %v2883_v47 }
  0xe5   : > { %v622_v55 = vpop.f32.mrf.mxu0  ;;  %2770 = vmatmul.msk.f32.vlgmr.msrb.gmra.mxu2 %vm522_vm1, %v3389_v54  ;;  %v1351_v56 = vrot.slane %v3389_v54, 1 }
  0xe6   : > { %v623_v60 = vadd.f32 %v3213_v30, %v622_v55  ;;  %2848 = vmatpush.msk.msrb.mxu2 %vm571_vm0, %v2847_v43 }
  0xe7   : > { %v3396_v62 = vsel %vm1329_vm8, %v1349_v36, %v1351_v56  ;;  %v653_v36 = vmax.f32 %v632_v23, 0.0 }
  0xe8   : > { %v650_v63 = vmax.f32 %v623_v60, 0.0  ;;  %2752 = vmatmul.msk.f32.gmra.mxu3 %vm522_vm1, %v3396_v62 }
  0xe9   : > { %v786_v55 = vrot.slane %v653_v36, 7 }
  0xea   : > { %v780_v2 = vrot.slane %v650_v63, 7 }
  0xeb   : > { %2768 = vmatmul.msk.f32.gmra.mxu1 %vm522_vm1, %v3351_v20  ;;  %2803 = vmatmul.msk.f32.gmra.mxu0 %vm522_vm1, %v3415_v11 }
  0xec   : > { %v3407_v1 = vsel %vm738_vm5, %v778_v50, %v780_v2  ;;  %v2727_v50 = vsel %vm1096_vm15, 1.0, %v4120_v45 }
  0xed   : > { %v625_v6 = vpop.f32.mrf.mxu0  ;;  %v3410_v7 = vmul.f32 %v2726_v3, %v3407_v1  ;;  %v1353_v9 = vrot.slane %v3407_v1, 1 }
  0xee   : > { %v626_v10 = vadd.f32 %v3213_v30, %v625_v6 }
  0xef   : > { %2771 = vmatmul.msk.f32.gmra.mxu2 %vm522_vm1, %v3410_v7  ;;  %v3420_v12 = vsel %vm1329_vm8, %v1351_v56, %v1353_v9  ;;  %v635_v56 = vadd.f32 %v3213_v30, %v634_v51 }
  0xf0   : > { %v651_v16 = vmax.f32 %v626_v10, 0.0  ;;  %2753 = vmatmul.msk.f32.gmra.mxu3 %vm522_vm1, %v3420_v12  ;;  %v2865_v10 = vld [vmem:[%s4115_s5 + $0x1c] sm:$0xf] }
  0xf1   : > { %v654_v4 = vmax.f32 %v635_v56, 0.0  ;;  %2866 = vmatpush.msk.msra.mxu0 %vm571_vm0, %v2865_v10 }
  0xf2   : > { %v782_v19 = vrot.slane %v651_v16, 7  ;;  %v829_v16 = vadd.s32 56, %v3202_v25 }
  0xf3   : > { %2769 = vmatmul.msk.f32.gmra.mxu1 %vm522_vm1, %v3415_v11  ;;  %2804 = vmatmul.msk.f32.gmra.mxu0 %vm522_vm1, %v3389_v54  ;;  %v788_v18 = vrot.slane %v654_v4, 7 }
  0xf4   : > { %v3432_v26 = vsel %vm738_vm5, %v780_v2, %v782_v19  ;;  %v2732_v2 = vsel %vm1107_vm2, 1.0, %v4120_v45  ;;  %v895_v22 = vand.u32 15, %v829_v16 }
  0xf5   : > { %v628_v28 = vpop.f32.mrf.mxu0  ;;  %v1355_v29 = vrot.slane %v3432_v26, 1  ;;  %v3493_v23 = vsel %vm738_vm5, %v786_v55, %v788_v18 }
  0xf6   : > { %v629_v31 = vadd.f32 %v3213_v30, %v628_v28  ;;  %vm1109_vm3 = vcmp.le.s32.totalorder %v895_v22, 14 }
  0xf7   : > { %2772 = vmatmul.msk.f32.gmra.mxu2 %vm522_vm1, %v3432_v26  ;;  %v3439_v33 = vsel %vm1329_vm8, %v1353_v9, %v1355_v29  ;;  %v1252_v9 = vrot.slane %v2732_v2, 6  ;;  %v2733_v36 = vsel %vm1109_vm3, 1.0, %v4120_v45 }
  0xf8   : > { %v652_v39 = vmax.f32 %v629_v31, 0.0  ;;  %2754 = vmatmul.msk.f32.gmra.mxu3 %vm522_vm1, %v3439_v33 }
  0xf9   : > { %v1255_v35 = vsel %vm1242_vm6, %v1252_v9, %v3223_v52 }
  0xfa   : > { %v784_v49 = vrot.slane %v652_v39, 7  ;;  %v1309_v47 = vmul.f32 %v1255_v35, %v3291_v53 }
  0xfb   : > { %2805 = vmatmul.msk.f32.gmra.mxu0 %vm522_vm1, %v3410_v7  ;;  %2831 = vmatmul.msk.f32.vlgmr.msra.gmra.mxu1 %vm522_vm1, %v3274_v44 }
  0xfc   : > { %v3458_v57 = vsel %vm738_vm5, %v782_v19, %v784_v49  ;;  %v3473_v6 = vsel %vm738_vm5, %v784_v49, %v786_v55  ;;  %v1253_v19 = vsel %vm1242_vm6, %v3223_v52, %v1252_v9  ;;  %v1256_v49 = vrot.slane %v2733_v36, 6 }
  0xfd   : > { %v3461_v60 = vmul.f32 %v2727_v50, %v3458_v57  ;;  %v1357_v63 = vrot.slane %v3458_v57, 1  ;;  %v1359_v15 = vrot.slane %v3473_v6, 1  ;;  %v1308_v28 = vmul.f32 %v1253_v19, %v3267_v38 }
  0xfe   : > { %v831_v50 = vadd.s32 72, %v3202_v25  ;;  %v1610_v17 = vrot.slane %v1309_v47, 2  ;;  %v1259_v9 = vsel %vm1242_vm6, %v1256_v49, %v3223_v52 }
  0xff   : > { %2773 = vmatmul.msk.f32.gmra.mxu2 %vm522_vm1, %v3461_v60  ;;  %v3468_v3 = vsel %vm1329_vm8, %v1355_v29, %v1357_v63  ;;  %v3490_v21 = vsel %vm1329_vm8, %v1357_v63, %v1359_v15  ;;  %v4123_v29 = vrot.slane %v3493_v23, 1  ;;  %v1608_v31 = vrot.slane %v1308_v28, 2  ;;  %v637_v63 = vpop.f32.mrf.mxu2 }
 0x100   : > { %2755 = vmatmul.msk.f32.gmra.mxu3 %vm522_vm1, %v3468_v3  ;;  %v909_v53 = vand.u32 15, %v831_v50  ;;  %v1311_v19 = vmul.f32 %v1259_v9, %v3328_v8  ;;  %v833_v28 = vadd.s32 88, %v3202_v25 }
 0x101   : > { %v3511_v39 = vsel %vm1329_vm8, %v1359_v15, %v4123_v29  ;;  %v3516_v43 = vsel %vm1598_vm9, %v1606_v34, %v1608_v31  ;;  %v1257_v34 = vsel %vm1242_vm6, %v3223_v52, %v1256_v49  ;;  %v3532_v55 = vsel %vm1598_vm9, %v1608_v31, %v1610_v17 }
 0x102   : > { %v1310_v56 = vmul.f32 %v1257_v34, %v3314_v0  ;;  %vm1111_vm7 = vcmp.le.s32.totalorder %v909_v53, 14  ;;  %v835_v34 = vadd.s32 104, %v3202_v25 }
 0x103   : > { %2806 = vmatmul.msk.f32.gmra.mxu0 %vm522_vm1, %v3432_v26  ;;  %2832 = vmatmul.msk.f32.gmra.mxu1 %vm522_vm1, %v3264_v37 }
 0x104   : > { %v1612_v4 = vrot.slane %v1310_v56, 2 }
 0x106   : > { %v3552_v16 = vsel %vm1598_vm9, %v1610_v17, %v1612_v4 }
 0x107   : > { %2774 = vmatmul.msk.f32.gmra.mxu2 %vm522_vm1, %v3473_v6 }
 0x108   : > { %2756 = vmatmul.msk.f32.gmra.mxu3 %vm522_vm1, %v3490_v21 }
 0x10b   : > { %2807 = vmatmul.msk.f32.gmra.mxu0 %vm522_vm1, %v3461_v60  ;;  %2833 = vmatmul.msk.f32.gmra.mxu1 %vm522_vm1, %v3516_v43 }
 0x10f   : > { %2777 = vmatmul.msk.f32.vlgmr.msra.gmra.mxu2 %vm522_vm1, %v3270_v40  ;;  %v838_v40 = vadd.s32 128, %v3202_v25 }
 0x110   : > { %2757 = vmatmul.msk.f32.gmra.mxu3 %vm522_vm1, %v3511_v39 }
 0x111   : > { %v958_v51 = vand.u32 15, %v838_v40 }
 0x113   : > { %2808 = vmatmul.msk.f32.gmra.mxu0 %vm522_vm1, %v3473_v6  ;;  %2834 = vmatmul.msk.f32.gmra.mxu1 %vm522_vm1, %v3532_v55  ;;  %vm1098_vm4 = vcmp.ge.s32.totalorder %v958_v51, 1 }
 0x114   : > { %v2728_v2 = vsel %vm1098_vm4, 1.0, %v4120_v45 }
 0x115   : > { %v3547_v10 = vmul.f32 %v2728_v2, %v3493_v23  ;;  %v725_v2 = vpop.f32.mrf.mxu2 }
 0x117   : > { %2778 = vmatmul.msk.f32.gmra.mxu2 %vm522_vm1, %v3277_v46  ;;  %v638_v46 = vadd.f32 %v3213_v30, %v637_v63  ;;  %v937_v63 = vand.u32 15, %v835_v34 }
 0x118   : > { %2813 = vmatmul.msk.f32.vlgmr.msrb.gmra.mxu3 %vm522_vm1, %v3308_v61  ;;  %v2734_v61 = vsel %vm1111_vm7, 1.0, %v4120_v45 }
 0x119   : > { %v655_v15 = vmax.f32 %v638_v46, 0.0  ;;  %v1260_v22 = vrot.slane %v2734_v61, 6  ;;  %vm1115_vm11 = vcmp.le.s32.totalorder %v937_v63, 14 }
 0x11a   : > { %v2736_v61 = vsel %vm1115_vm11, 1.0, %v4120_v45 }
 0x11b   : > { %2809 = vmatmul.msk.f32.gmra.mxu0 %vm522_vm1, %v3547_v10  ;;  %2835 = vmatmul.msk.f32.gmra.mxu1 %vm522_vm1, %v3552_v16  ;;  %v3562_v31 = vrot.slane %v655_v15, 7  ;;  %v1261_v35 = vsel %vm1242_vm6, %v3223_v52, %v1260_v22 }
 0x11c   : > { %v1312_v47 = vmul.f32 %v1261_v35, %v3351_v20 }
 0x11d   : > { %v3570_v8 = vsel %vm738_vm5, %v788_v18, %v3562_v31  ;;  %v1263_v18 = vsel %vm1242_vm6, %v1260_v22, %v3223_v52 }
 0x11e   : > { %4131 = vst [vmem:[#allocation3_spill] sm:$0xff] %v3570_v8  ;;  %v1313_v50 = vmul.f32 %v1263_v18, %v3369_v32 }
 0x11f   : > { %2779 = vmatmul.msk.f32.gmra.mxu2 %vm522_vm1, %v3274_v44  ;;  %v1614_v44 = vrot.slane %v1311_v19, 2  ;;  %v1268_v19 = vrot.slane %v2736_v61, 6 }
 0x120   : > { %2814 = vmatmul.msk.f32.gmra.mxu3 %vm522_vm1, %v3251_v24  ;;  %v923_v24 = vand.u32 15, %v833_v28  ;;  %v1618_v53 = vrot.slane %v1313_v50, 2  ;;  %v837_v28 = vadd.s32 120, %v3202_v25 }
 0x121   : > { %v3573_v36 = vsel %vm1598_vm9, %v1612_v4, %v1614_v44 }
 0x122   : > { %vm1113_vm10 = vcmp.le.s32.totalorder %v923_v24, 14  ;;  %v1269_v24 = vsel %vm1242_vm6, %v3223_v52, %v1268_v19 }
 0x123   : > { %2810 = vmatmul.msk.f32.gmra.mxu0 %vm522_vm1, %v3570_v8  ;;  %2836 = vmatmul.msk.f32.gmra.mxu1 %vm522_vm1, %v3573_v36  ;;  %v2735_v40 = vsel %vm1113_vm10, 1.0, %v4120_v45 }
 0x124   : > { %v1264_v17 = vrot.slane %v2735_v40, 6  ;;  %v1271_v40 = vsel %vm1242_vm6, %v1268_v19, %v3223_v52 }
 0x126   : > { %v1265_v56 = vsel %vm1242_vm6, %v3223_v52, %v1264_v17  ;;  %v1267_v9 = vsel %vm1242_vm6, %v1264_v17, %v3223_v52 }
 0x127   : > { %2780 = vmatmul.msk.f32.gmra.mxu2 %vm522_vm1, %v3264_v37  ;;  %v1616_v37 = vrot.slane %v1312_v47, 2 }
 0x128   : > { %2815 = vmatmul.msk.f32.gmra.mxu3 %vm522_vm1, %v3281_v48 }
 0x129   : > { %v3588_v49 = vsel %vm1598_vm9, %v1614_v44, %v1616_v37  ;;  %v3605_v32 = vsel %vm1598_vm9, %v1616_v37, %v1618_v53  ;;  %v3634_v44 = vpop.f32.mrf.mxu2 }
 0x12b   : > { %2837 = vmatmul.msk.f32.gmra.mxu1 %vm522_vm1, %v3588_v49  ;;  %2867 = vmatmul.msk.f32.vlgmr.msra.gmra.mxu0 %vm522_vm1, %v3281_v48  ;;  %v1314_v48 = vmul.f32 %v1265_v56, %v3389_v54  ;;  %v839_v56 = vadd.s32 136, %v3202_v25 }
 0x12d   : > { %v1620_v4 = vrot.slane %v1314_v48, 2 }
 0x12f   : > { %2781 = vmatmul.msk.f32.gmra.mxu2 %vm522_vm1, %v3516_v43  ;;  %v3622_v15 = vsel %vm1598_vm9, %v1618_v53, %v1620_v4 }
 0x130   : > { %2816 = vmatmul.msk.f32.gmra.mxu3 %vm522_vm1, %v3299_v59 }
 0x131   : > { %v3654_v50 = vpop.f32.mrf.mxu2 }
 0x133   : > { %v3597_v51 = vpop.f32.mrf.mxu3  ;;  %2838 = vmatmul.msk.f32.gmra.mxu1 %vm522_vm1, %v3605_v32  ;;  %2868 = vmatmul.msk.f32.gmra.mxu0 %vm522_vm1, %v3299_v59  ;;  %v1315_v59 = vmul.f32 %v1267_v9, %v3407_v1  ;;  %v951_v1 = vand.u32 15, %v837_v28  ;;  %v965_v9 = vand.u32 15, %v839_v56 }
 0x135   : > { %v1622_v35 = vrot.slane %v1315_v59, 2  ;;  %vm1117_vm12 = vcmp.le.s32.totalorder %v951_v1, 14  ;;  %vm1119_vm13 = vcmp.le.s32.totalorder %v965_v9, 14  ;;  %v3689_v59 = vpop.f32.mrf.mxu0 }
 0x136   : > { %v2737_v17 = vsel %vm1117_vm12, 1.0, %v4120_v45  ;;  %v2738_v1 = vsel %vm1119_vm13, 1.0, %v4120_v45 }
 0x137   : > { %2782 = vmatmul.msk.f32.gmra.mxu2 %vm522_vm1, %v3532_v55  ;;  %v3641_v47 = vsel %vm1598_vm9, %v1620_v4, %v1622_v35  ;;  %v1272_v53 = vrot.slane %v2737_v17, 6 }
 0x138   : > { %2817 = vmatmul.msk.f32.gmra.mxu3 %vm522_vm1, %v3319_v5 }
 0x139   : > { %v1273_v4 = vsel %vm1242_vm6, %v3223_v52, %v1272_v53 }
 0x13b   : > { %v3614_v46 = vpop.f32.mrf.mxu3  ;;  %2839 = vmatmul.msk.f32.gmra.mxu1 %vm522_vm1, %v3622_v15  ;;  %2869 = vmatmul.msk.f32.gmra.mxu0 %vm522_vm1, %v3319_v5  ;;  %v1316_v5 = vmul.f32 %v1269_v24, %v3432_v26  ;;  %v1275_v24 = vsel %vm1242_vm6, %v1272_v53, %v3223_v52 }
 0x13d   : > { %v1624_v18 = vrot.slane %v1316_v5, 2  ;;  %v1319_v5 = vmul.f32 %v1275_v24, %v3493_v23  ;;  %v3720_v9 = vpop.f32.mrf.mxu0 }
 0x13f   : > { %2783 = vmatmul.msk.f32.gmra.mxu2 %vm522_vm1, %v3552_v16  ;;  %v3660_v34 = vsel %vm1598_vm9, %v1622_v35, %v1624_v18  ;;  %v726_v35 = vadd.f32 %v3213_v30, %v725_v2  ;;  %v3709_v2 = vstv %s663_s10  ;;  %v1630_v53 = vrot.slane %v1319_v5, 2 }
 0x140   : > { %2818 = vmatmul.msk.f32.gmra.mxu3 %vm522_vm1, %v3337_v14 }
 0x143   : > { %v3631_v22 = vpop.f32.mrf.mxu3  ;;  %2840 = vmatmul.msk.f32.gmra.mxu1 %vm522_vm1, %v3641_v47  ;;  %2870 = vmatmul.msk.f32.gmra.mxu0 %vm522_vm1, %v3337_v14  ;;  %v1317_v14 = vmul.f32 %v1271_v40, %v3458_v57  ;;  %v3677_v57 = vpop.f32.mrf.mxu2  ;;  %v1276_v40 = vrot.slane %v2738_v1, 6 }
 0x145   : > { %v1626_v48 = vrot.slane %v1317_v14, 2  ;;  %v3745_v45 = vpop.f32.mrf.mxu0 }
 0x147   : > { %2784 = vmatmul.msk.f32.gmra.mxu2 %vm522_vm1, %v3573_v36  ;;  %v3680_v61 = vsel %vm1598_vm9, %v1624_v18, %v1626_v48  ;;  %v731_v18 = vmax.f32 %v726_v35, 0.0 }
 0x148   : > { %2819 = vmatmul.msk.f32.gmra.mxu3 %vm522_vm1, %v3356_v27 }
 0x149   : > { %v3716_v56 = vmul.f32 %v3709_v2, %v731_v18  ;;  %v1279_v18 = vsel %vm1242_vm6, %v1276_v40, %v3223_v52 }
 0x14b   : > { %v3650_v37 = vpop.f32.mrf.mxu3  ;;  %2841 = vmatmul.msk.f32.gmra.mxu1 %vm522_vm1, %v3660_v34  ;;  %2871 = vmatmul.msk.f32.gmra.mxu0 %vm522_vm1, %v3356_v27  ;;  %v1318_v27 = vmul.f32 %v1273_v4, %v3473_v6  ;;  %v3711_v17 = vpop.f32.mrf.mxu2  ;;  %v1277_v4 = vsel %vm1242_vm6, %v3223_v52, %v1276_v40  ;;  %v4122_v35 = vrot.slane %v3716_v56, 7 }
 0x14d   : > { %v1628_v28 = vrot.slane %v1318_v27, 2  ;;  %v3773_v52 = vpop.f32.mrf.mxu0 }
 0x14f   : > { %2785 = vmatmul.msk.f32.gmra.mxu2 %vm522_vm1, %v3588_v49  ;;  %v3726_v27 = vsel %vm1598_vm9, %v1628_v28, %v1630_v53 }
 0x150   : > { %2820 = vmatmul.msk.f32.gmra.mxu3 %vm522_vm1, %v3378_v42 }
 0x153   : > { %v3670_v63 = vpop.f32.mrf.mxu3  ;;  %2842 = vmatmul.msk.f32.gmra.mxu1 %vm522_vm1, %v3680_v61  ;;  %2872 = vmatmul.msk.f32.gmra.mxu0 %vm522_vm1, %v3378_v42  ;;  %v3700_v42 = vsel %vm1598_vm9, %v1626_v48, %v1628_v28  ;;  %v1531_v48 = vpop.f32.mrf.mxu1  ;;  %v3741_v28 = vsel %vm738_vm5, %v3562_v31, %v4122_v35 }
 0x157   : > { %2786 = vmatmul.msk.f32.gmra.mxu2 %vm522_vm1, %v3605_v32 }
 0x158   : > { %2821 = vmatmul.msk.f32.gmra.mxu3 %vm522_vm1, %v3396_v62 }
 0x15b   : > { %v3691_v19 = vpop.f32.mrf.mxu3  ;;  %2843 = vmatmul.msk.f32.gmra.mxu1 %vm522_vm1, %v3700_v42  ;;  %2873 = vmatmul.msk.f32.gmra.mxu0 %vm522_vm1, %v3396_v62  ;;  %v1320_v62 = vmul.f32 %v1277_v4, %v3570_v8  ;;  %v1534_v4 = vpop.f32.mrf.mxu1 }
 0x15d   : > { %v1939_v5 = vrot.slane %v1320_v62, 2  ;;  %v3755_v62 = vmul.f32 %v1279_v18, %v3741_v28 }
 0x15f   : > { %2787 = vmatmul.msk.f32.gmra.mxu2 %vm522_vm1, %v3622_v15  ;;  %4133 = vst [vmem:[#allocation5_spill] sm:$0xff] %v3755_v62  ;;  %v4125_v29 = vrot.slane %v3755_v62, 2  ;;  %v3788_v62 = vpop.f32.mrf.mxu0 }
 0x160   : > { %2822 = vmatmul.msk.f32.gmra.mxu3 %vm522_vm1, %v3420_v12 }
 0x163   : > { %v3713_v14 = vpop.f32.mrf.mxu3  ;;  %2844 = vmatmul.msk.f32.gmra.mxu1 %vm522_vm1, %v3726_v27  ;;  %2874 = vmatmul.msk.f32.gmra.mxu0 %vm522_vm1, %v3420_v12  ;;  %v3750_v12 = vsel %vm1598_vm9, %v1630_v53, %v1939_v5  ;;  %v3769_v53 = vsel %vm1598_vm9, %v1939_v5, %v4125_v29  ;;  %v1537_v18 = vpop.f32.mrf.mxu1  ;;  %v1843_v29 = vrot.slane %v3570_v8, 1 }
 0x164   : > { %4132 = vst [vmem:[#allocation4_spill] sm:$0xff] %v3750_v12 }
 0x165   : > { %4134 = vst [vmem:[#allocation6_spill] sm:$0xff] %v3769_v53 }
 0x167   : > { %2788 = vmatmul.msk.f32.gmra.mxu2 %vm522_vm1, %v3641_v47 }
 0x168   : > { %2823 = vmatmul.msk.f32.gmra.mxu3 %vm522_vm1, %v3439_v33  ;;  %v1564_v24 = vpop.f32.mrf.mxu2 }
 0x16b   : > { %v3735_v1 = vpop.f32.mrf.mxu3  ;;  %2845 = vmatmul.msk.f32.gmra.mxu1 %vm522_vm1, %v3750_v12  ;;  %2875 = vmatmul.msk.f32.gmra.mxu0 %vm522_vm1, %v3439_v33 }
 0x16f   : > { %2789 = vmatmul.msk.f32.gmra.mxu2 %vm522_vm1, %v3660_v34 }
 0x170   : > { %2824 = vmatmul.msk.f32.gmra.mxu3 %vm522_vm1, %v3468_v3 }
 0x172   : > { %v1567_v31 = vpop.f32.mrf.mxu2 }
 0x173   : > { %v1448_v40 = vpop.f32.mrf.mxu3  ;;  %2846 = vmatmul.msk.f32.gmra.mxu1 %vm522_vm1, %v3769_v53  ;;  %2876 = vmatmul.msk.f32.gmra.mxu0 %vm522_vm1, %v3468_v3 }
 0x174   : > { %v3761_v35 = vadd.f32 %v1564_v24, %v1448_v40 }
 0x177   : > { %2790 = vmatmul.msk.f32.gmra.mxu2 %vm522_vm1, %v3680_v61 }
 0x178   : > { %2825 = vmatmul.msk.f32.gmra.mxu3 %vm522_vm1, %v3490_v21 }
 0x17a   : > { %v1570_v33 = vpop.f32.mrf.mxu2 }
 0x17b   : > { %v1451_v24 = vpop.f32.mrf.mxu3  ;;  %2877 = vmatmul.msk.f32.gmra.mxu0 %vm522_vm1, %v3490_v21  ;;  %v729_v21 = vadd.f32 %v3213_v30, %v3634_v44 }
 0x17c   : > { %v3779_v40 = vadd.f32 %v1567_v31, %v1451_v24  ;;  %v2350_v31 = vld [vmem:[%s4117_s7] sm:$0xf]  ;;  %v4137_v24 = vrot.slane %v3493_v23, 1  ;;  %v3809_v23 = vpop.f32.mrf.mxu0 }
 0x17d   : > { %2901 = vmatpush.msk.msrb.mxu1 %vm571_vm0, %v2350_v31 }
 0x17e   : > { %4135 = vst [vmem:[#allocation7_spill] sm:$0xff] %v3779_v40  ;;  %v1844_v12 = vsel %vm1329_vm8, %v4137_v24, %v1843_v29  ;;  %v732_v40 = vmax.f32 %v729_v21, 0.0 }
 0x17f   : > { %2791 = vmatmul.msk.f32.gmra.mxu2 %vm522_vm1, %v3700_v42 }
 0x180   : > { %2826 = vmatmul.msk.f32.gmra.mxu3 %vm522_vm1, %v3511_v39  ;;  %v735_v30 = vmul.f32 %v3709_v2, %v732_v40  ;;  %v1535_v2 = vadd.f32 %v1534_v4, %v3677_v57 }
 0x182   : > { %v1573_v5 = vpop.f32.mrf.mxu2  ;;  %v812_v21 = vrot.slane %v735_v30, 7 }
 0x183   : > { %v1454_v53 = vpop.f32.mrf.mxu3  ;;  %2878 = vmatmul.msk.f32.gmra.mxu0 %vm522_vm1, %v3511_v39  ;;  %v1532_v39 = vadd.f32 %v1531_v48, %v3654_v50 }
 0x184   : > { %v3790_v3 = vadd.f32 %v1570_v33, %v1454_v53  ;;  %v3843_v57 = vsel %vm738_vm5, %v812_v21, 0.0 }
 0x186   : > { %4136 = vst [vmem:[#allocation8_spill] sm:$0xff] %v3790_v3  ;;  %v1845_v3 = vrot.slane %v3741_v28, 1 }
 0x187   : > { %2792 = vmatmul.msk.f32.gmra.mxu2 %vm522_vm1, %v3726_v27 }
 0x188   : > { %2827 = vmatmul.msk.f32.gmra.mxu3 %vm522_vm1, %v1844_v12  ;;  %v1846_v31 = vsel %vm1329_vm8, %v1843_v29, %v1845_v3  ;;  %v4139_v29 = vrot.slane %v3716_v56, 7  ;;  %v1538_v56 = vadd.f32 %v1537_v18, %v3711_v17 }
 0x18a   : > { %v1576_v53 = vpop.f32.mrf.mxu2  ;;  %v3829_v50 = vsel %vm738_vm5, %v4139_v29, %v812_v21 }
 0x18b   : > { %v1457_v33 = vpop.f32.mrf.mxu3  ;;  %2879 = vmatmul.msk.f32.gmra.mxu0 %vm522_vm1, %v1844_v12 }
 0x18c   : > { %v3807_v8 = vadd.f32 %v1573_v5, %v1457_v33 }
 0x18e   : > { %4138 = vst [vmem:[#allocation9_spill] sm:$0xff] %v3807_v8  ;;  %v3820_v8 = vpop.f32.mrf.mxu0 }
 0x18f   : > { %2849 = vmatmul.msk.f32.vlgmr.msrb.gmra.mxu2 %vm522_vm1, %v3296_v58  ;;  %v1540_v58 = vpop.f32.mrf.mxu1 }
 0x190   : > { %2828 = vmatmul.msk.f32.gmra.mxu3 %vm522_vm1, %v1846_v31  ;;  %v1541_v17 = vadd.f32 %v1540_v58, %v3597_v51 }
 0x192   : > { %v1684_v44 = vpop.f32.mrf.mxu2 }
 0x193   : > { %v1732_v24 = vadd.f32 %v1684_v44, %v1532_v39  ;;  %v1460_v5 = vpop.f32.mrf.mxu3  ;;  %2880 = vmatmul.msk.f32.gmra.mxu0 %vm522_vm1, %v1846_v31 }
 0x194   : > { %v3818_v33 = vadd.f32 %v1576_v53, %v1460_v5 }
 0x195   : > { %v1824_v12 = vadd.f32 %v3689_v59, %v1732_v24 }
 0x196   : > { %v3846_v59 = vpop.f32.mrf.mxu0 }
 0x197   : > { %2850 = vmatmul.msk.f32.gmra.mxu2 %vm522_vm1, %v3267_v38  ;;  %v2126_v38 = vrot.slane %v3829_v50, 1  ;;  %v1543_v4 = vpop.f32.mrf.mxu1 }
 0x198   : > { %2885 = vmatmul.msk.f32.vlgmr.msra.gmra.mxu3 %vm522_vm1, %v3516_v43 }
 0x199   : > { %v2127_v43 = vsel %vm1329_vm8, %v1845_v3, %v2126_v38  ;;  %v2128_v3 = vrot.slane %v3843_v57, 1 }
 0x19a   : > { %v1687_v48 = vpop.f32.mrf.mxu2 }
 0x19b   : > { %v1733_v40 = vadd.f32 %v1687_v48, %v1535_v2  ;;  %v1871_v53 = vpop.f32.mrf.mxu3  ;;  %2881 = vmatmul.msk.f32.gmra.mxu0 %vm522_vm1, %v2127_v43 }
 0x19c   : > { %v3834_v30 = vadd.f32 %v1871_v53, %v1824_v12 }
 0x19d   : > { %v1825_v39 = vadd.f32 %v3720_v9, %v1733_v40 }
 0x19e   : > { %v1800_v5 = vpop.f32.mrf.mxu0 }
 0x19f   : > { %2851 = vmatmul.msk.f32.gmra.mxu2 %vm522_vm1, %v3334_v13  ;;  %v1546_v2 = vpop.f32.mrf.mxu1 }
 0x1a0   : > { %2886 = vmatmul.msk.f32.gmra.mxu3 %vm522_vm1, %v3532_v55  ;;  %v2129_v55 = vsel %vm1329_vm8, %v2126_v38, %v2128_v3 }
 0x1a2   : > { %v1690_v31 = vpop.f32.mrf.mxu2 }
 0x1a3   : > { %v1734_v44 = vadd.f32 %v1690_v31, %v1538_v56  ;;  %v1874_v13 = vpop.f32.mrf.mxu3  ;;  %2882 = vmatmul.msk.f32.gmra.mxu0 %vm522_vm1, %v2129_v55 }
 0x1a4   : > { %v3851_v24 = vadd.f32 %v1874_v13, %v1825_v39 }
 0x1a5   : > { %v1826_v9 = vadd.f32 %v3745_v45, %v1734_v44 }
 0x1a6   : > { %v1803_v40 = vpop.f32.mrf.mxu0 }
 0x1a7   : > { %2852 = vmatmul.msk.f32.gmra.mxu2 %vm522_vm1, %v3314_v0  ;;  %v1544_v0 = vadd.f32 %v1543_v4, %v3614_v46  ;;  %v1549_v53 = vpop.f32.mrf.mxu1 }
 0x1a8   : > { %2887 = vmatmul.msk.f32.gmra.mxu3 %vm522_vm1, %v3552_v16 }
 0x1aa   : > { %v1693_v18 = vpop.f32.mrf.mxu2 }
 0x1ab   : > { %v1735_v21 = vadd.f32 %v1693_v18, %v1541_v17  ;;  %v1877_v29 = vpop.f32.mrf.mxu3 }
 0x1ac   : > { %v3861_v48 = vadd.f32 %v1877_v29, %v1826_v9 }
 0x1ad   : > { %v1827_v51 = vadd.f32 %v3773_v52, %v1735_v21 }
 0x1ae   : > { %v1806_v56 = vpop.f32.mrf.mxu0 }
 0x1af   : > { %2853 = vmatmul.msk.f32.gmra.mxu2 %vm522_vm1, %v3375_v41  ;;  %v1547_v41 = vadd.f32 %v1546_v2, %v3631_v22  ;;  %v1552_v4 = vpop.f32.mrf.mxu1 }
 0x1b0   : > { %2888 = vmatmul.msk.f32.gmra.mxu3 %vm522_vm1, %v3573_v36 }
 0x1b2   : > { %v1696_v16 = vpop.f32.mrf.mxu2 }
 0x1b3   : > { %v1736_v58 = vadd.f32 %v1696_v16, %v1544_v0  ;;  %v1880_v12 = vpop.f32.mrf.mxu3 }
 0x1b4   : > { %v3869_v45 = vadd.f32 %v1880_v12, %v1827_v51 }
 0x1b5   : > { %v1828_v46 = vadd.f32 %v3788_v62, %v1736_v58 }
 0x1b6   : > { %v1809_v44 = vpop.f32.mrf.mxu0 }
 0x1b7   : > { %2854 = vmatmul.msk.f32.gmra.mxu2 %vm522_vm1, %v3351_v20  ;;  %v1550_v20 = vadd.f32 %v1549_v53, %v3650_v37  ;;  %v1555_v13 = vpop.f32.mrf.mxu1 }
 0x1b8   : > { %2889 = vmatmul.msk.f32.gmra.mxu3 %vm522_vm1, %v3588_v49 }
 0x1ba   : > { %v1699_v36 = vpop.f32.mrf.mxu2 }
 0x1bb   : > { %v1737_v38 = vadd.f32 %v1699_v36, %v1547_v41  ;;  %v1883_v43 = vpop.f32.mrf.mxu3 }
 0x1bc   : > { %v3877_v52 = vadd.f32 %v1883_v43, %v1828_v46  ;;  %v840_v46 = vadd.s32 144, %v3202_v25  ;;  %v4140_v43 = vld [vmem:[#allocation7_spill] sm:$0xff] }
 0x1bd   : > { %v1829_v22 = vadd.f32 %v3809_v23, %v1737_v38 }
 0x1be   : > { %v1812_v17 = vpop.f32.mrf.mxu0 }
 0x1bf   : > { %2855 = vmatmul.msk.f32.gmra.mxu2 %vm522_vm1, %v3415_v11  ;;  %v1553_v11 = vadd.f32 %v1552_v4, %v3670_v63  ;;  %v1558_v21 = vpop.f32.mrf.mxu1 }
 0x1c0   : > { %2890 = vmatmul.msk.f32.gmra.mxu3 %vm522_vm1, %v3605_v32 }
 0x1c2   : > { %v1702_v49 = vpop.f32.mrf.mxu2 }
 0x1c3   : > { %v1738_v31 = vadd.f32 %v1702_v49, %v1550_v20  ;;  %v1886_v39 = vpop.f32.mrf.mxu3 }
 0x1c4   : > { %v3885_v62 = vadd.f32 %v1886_v39, %v1829_v22  ;;  %v4141_v22 = vmov 0.0   ;;  %v4142_v39 = vld [vmem:[#allocation3_spill] sm:$0xff] }
 0x1c5   : > { %v1830_v37 = vadd.f32 %v3820_v8, %v1738_v31 }
 0x1c7   : > { %2856 = vmatmul.msk.f32.gmra.mxu2 %vm522_vm1, %v3389_v54  ;;  %v1556_v54 = vadd.f32 %v1555_v13, %v3691_v19  ;;  %v1561_v16 = vpop.f32.mrf.mxu1 }
 0x1c8   : > { %2891 = vmatmul.msk.f32.gmra.mxu3 %vm522_vm1, %v3622_v15 }
 0x1ca   : > { %v1705_v32 = vpop.f32.mrf.mxu2 }
 0x1cb   : > { %v1739_v3 = vadd.f32 %v1705_v32, %v1553_v11  ;;  %v1889_v55 = vpop.f32.mrf.mxu3  ;;  %v4144_v32 = vld [vmem:[#allocation8_spill] sm:$0xff] }
 0x1cc   : > { %v3893_v23 = vadd.f32 %v1889_v55, %v1830_v37 }
 0x1cd   : > { %v1831_v63 = vadd.f32 %v3846_v59, %v1739_v3  ;;  %v1815_v59 = vpop.f32.mrf.mxu0 }
 0x1cf   : > { %2857 = vmatmul.msk.f32.gmra.mxu2 %vm522_vm1, %v3410_v7  ;;  %v1559_v7 = vadd.f32 %v1558_v21, %v3713_v14  ;;  %v1967_v20 = vpop.f32.mrf.mxu1  ;;  %v4146_v21 = vld [vmem:[#allocation6_spill] sm:$0xff] }
 0x1d0   : > { %2892 = vmatmul.msk.f32.gmra.mxu3 %vm522_vm1, %v3641_v47 }
 0x1d2   : > { %v1708_v15 = vpop.f32.mrf.mxu2 }
 0x1d3   : > { %v1740_v18 = vadd.f32 %v1708_v15, %v1556_v54  ;;  %v1892_v9 = vpop.f32.mrf.mxu3  ;;  %v4145_v54 = vld [vmem:[#allocation2_spill] sm:$0xff] }
 0x1d4   : > { %v3901_v8 = vadd.f32 %v1892_v9, %v1831_v63 }
 0x1d5   : > { %v1832_v29 = vadd.f32 %v1800_v5, %v1740_v18  ;;  %v1818_v5 = vpop.f32.mrf.mxu0 }
 0x1d7   : > { %2858 = vmatmul.msk.f32.gmra.mxu2 %vm522_vm1, %v3432_v26  ;;  %v1562_v26 = vadd.f32 %v1561_v16, %v3735_v1  ;;  %v1970_v18 = vpop.f32.mrf.mxu1 }
 0x1d8   : > { %2893 = vmatmul.msk.f32.gmra.mxu3 %vm522_vm1, %v3660_v34 }
 0x1da   : > { %v1711_v47 = vpop.f32.mrf.mxu2 }
 0x1db   : > { %v1741_v19 = vadd.f32 %v1711_v47, %v1559_v7  ;;  %v1895_v2 = vpop.f32.mrf.mxu3  ;;  %v4147_v47 = vld [vmem:[#allocation9_spill] sm:$0xff] }
 0x1dc   : > { %v3908_v0 = vadd.f32 %v1895_v2, %v1832_v29 }
 0x1dd   : > { %v1833_v34 = vadd.f32 %v1803_v40, %v1741_v19 }
 0x1df   : > { %2859 = vmatmul.msk.f32.gmra.mxu2 %vm522_vm1, %v3461_v60  ;;  %v841_v60 = vadd.s32 152, %v3202_v25 }
 0x1e0   : > { %2894 = vmatmul.msk.f32.gmra.mxu3 %vm522_vm1, %v3680_v61 }
 0x1e1   : > { %v979_v40 = vand.u32 15, %v841_v60 }
 0x1e2   : > { %v1714_v51 = vpop.f32.mrf.mxu2 }
 0x1e3   : > { %v1742_v58 = vadd.f32 %v1714_v51, %v1562_v26  ;;  %v1898_v14 = vpop.f32.mrf.mxu3  ;;  %vm1121_vm0 = vcmp.le.s32.totalorder %v979_v40, 14 }
 0x1e4   : > { %v3915_v12 = vadd.f32 %v1898_v14, %v1833_v34  ;;  %v2739_v31 = vsel %vm1121_vm0, 1.0, %v4141_v22  ;;  %v1973_v14 = vpop.f32.mrf.mxu1 }
 0x1e5   : > { %v1834_v41 = vadd.f32 %v1806_v56, %v1742_v58  ;;  %v1280_v25 = vrot.slane %v2739_v31, 6 }
 0x1e7   : > { %2860 = vmatmul.msk.f32.gmra.mxu2 %vm522_vm1, %v3473_v6  ;;  %v1821_v6 = vpop.f32.mrf.mxu0  ;;  %v1281_v15 = vsel %vm1242_vm6, %v4145_v54, %v1280_v25  ;;  %v1323_v51 = vmul.f32 %v1280_v25, %v3843_v57  ;;  %v2016_v25 = vadd.f32 %v1970_v18, %v3851_v24 }
 0x1e8   : > { %2895 = vmatmul.msk.f32.gmra.mxu3 %vm522_vm1, %v3700_v42  ;;  %v1322_v9 = vmul.f32 %v1281_v15, %v3829_v50 }
 0x1ea   : > { %v1717_v53 = vpop.f32.mrf.mxu2  ;;  %v2222_v2 = vrot.slane %v1322_v9, 2 }
 0x1eb   : > { %v1743_v61 = vadd.f32 %v1717_v53, %v3761_v35  ;;  %v1901_v1 = vpop.f32.mrf.mxu3  ;;  %v972_v35 = vand.u32 15, %v840_v46 }
 0x1ec   : > { %v3923_v36 = vadd.f32 %v1901_v1, %v1834_v41 }
 0x1ed   : > { %v1835_v38 = vadd.f32 %v1809_v44, %v1743_v61  ;;  %vm1100_vm5 = vcmp.ge.s32.totalorder %v972_v35, 1  ;;  %v2224_v61 = vrot.slane %v1323_v51, 2 }
 0x1ee   : > { %v2729_v44 = vsel %vm1100_vm5, 1.0, %v4141_v22  ;;  %v3970_v22 = vld [vmem:[%s4116_s6] ss:$0 sm:$0xff] }
 0x1ef   : > { %2861 = vmatmul.msk.f32.gmra.mxu2 %vm522_vm1, %v3547_v10  ;;  %v4143_v10 = vld [vmem:[#allocation4_spill] sm:$0xff]  ;;  %v2154_v13 = vpop.f32.mrf.mxu0  ;;  %v1180_v63 = vmul.f32 %v2729_v44, %v3741_v28  ;;  %v4148_v28 = vld [vmem:[#allocation5_spill] sm:$0xff]  ;;  %v2225_v57 = vsel %vm1598_vm9, %v2222_v2, %v2224_v61 }
 0x1f0   : > { %2896 = vmatmul.msk.f32.gmra.mxu3 %vm522_vm1, %v3726_v27  ;;  %v4149_v34 = vrot.slane %v4148_v28, 2 }
 0x1f2   : > { %v1720_v42 = vpop.f32.mrf.mxu2  ;;  %v2223_v58 = vsel %vm1598_vm9, %v4149_v34, %v2222_v2 }
 0x1f3   : > { %v1744_v56 = vadd.f32 %v1720_v42, %v4140_v43  ;;  %v1904_v4 = vpop.f32.mrf.mxu3  ;;  %v2015_v43 = vadd.f32 %v1967_v20, %v3834_v30 }
 0x1f4   : > { %v3931_v49 = vadd.f32 %v1904_v4, %v1835_v38 }
 0x1f5   : > { %v1836_v11 = vadd.f32 %v1812_v17, %v1744_v56 }
 0x1f7   : > { %2862 = vmatmul.msk.f32.gmra.mxu2 %vm522_vm1, %v4142_v39  ;;  %v2157_v26 = vpop.f32.mrf.mxu0 }
 0x1f8   : > { %2897 = vmatmul.msk.f32.gmra.mxu3 %vm522_vm1, %v4143_v10 }
 0x1fa   : > { %v1723_v27 = vpop.f32.mrf.mxu2 }
 0x1fb   : > { %v1745_v37 = vadd.f32 %v1723_v27, %v4144_v32  ;;  %v1907_v3 = vpop.f32.mrf.mxu3  ;;  %v2017_v32 = vadd.f32 %v1973_v14, %v3861_v48 }
 0x1fc   : > { %v3940_v55 = vadd.f32 %v1907_v3, %v1836_v11 }
 0x1fd   : > { %v1837_v7 = vadd.f32 %v1815_v59, %v1745_v37 }
 0x1ff   : > { %2863 = vmatmul.msk.f32.gmra.mxu2 %vm522_vm1, %v1180_v63  ;;  %v2160_v40 = vpop.f32.mrf.mxu0 }
 0x200   : > { %2898 = vmatmul.msk.f32.gmra.mxu3 %vm522_vm1, %v4146_v21 }
 0x202   : > { %v1726_v17 = vpop.f32.mrf.mxu2 }
 0x203   : > { %v1746_v29 = vadd.f32 %v1726_v17, %v4147_v47  ;;  %v1910_v19 = vpop.f32.mrf.mxu3 }
 0x204   : > { %v3950_v16 = vadd.f32 %v1910_v19, %v1837_v7 }
 0x205   : > { %v1838_v60 = vadd.f32 %v1818_v5, %v1746_v29 }
 0x207   : > { %2864 = vmatmul.msk.f32.gmra.mxu2 %vm522_vm1, %v3829_v50  ;;  %v1976_v50 = vpop.f32.mrf.mxu1  ;;  %v2163_v4 = vpop.f32.mrf.mxu0 }
 0x208   : > { %2899 = vmatmul.msk.f32.gmra.mxu3 %vm522_vm1, %v2223_v58  ;;  %v2018_v21 = vadd.f32 %v1976_v50, %v3869_v45 }
 0x20a   : > { %v1729_v59 = vpop.f32.mrf.mxu2 }
 0x20b   : > { %v1747_v53 = vadd.f32 %v1729_v59, %v3818_v33  ;;  %v1913_v41 = vpop.f32.mrf.mxu3 }
 0x20c   : > { %v3960_v1 = vadd.f32 %v1913_v41, %v1838_v60 }
 0x20d   : > { %v1839_v42 = vadd.f32 %v1821_v6, %v1747_v53 }
 0x20f   : > { %v1979_v39 = vpop.f32.mrf.mxu1  ;;  %v2166_v44 = vpop.f32.mrf.mxu0 }
 0x210   : > { %2900 = vmatmul.msk.f32.gmra.mxu3 %vm522_vm1, %v2225_v57  ;;  %v2019_v28 = vadd.f32 %v1979_v39, %v3877_v52 }
 0x212   : > { %v2059_v46 = vpop.f32.mrf.mxu2 }
 0x213   : > { %v1916_v38 = vpop.f32.mrf.mxu3  ;;  %v2107_v5 = vadd.f32 %v2059_v46, %v2015_v43 }
 0x214   : > { %v3965_v56 = vadd.f32 %v1916_v38, %v1839_v42 }
 0x215   : > { %v2202_v35 = vadd.f32 %v2154_v13, %v2107_v5 }
 0x217   : > { %v1982_v3 = vpop.f32.mrf.mxu1  ;;  %v2169_v7 = vpop.f32.mrf.mxu0 }
 0x21a   : > { %v2062_v33 = vpop.f32.mrf.mxu2 }
 0x21b   : > { %v2250_v31 = vpop.f32.mrf.mxu3  ;;  %v2108_v6 = vadd.f32 %v2062_v33, %v2016_v25 }
 0x21c   : > { %v2298_v10 = vadd.f32 %v2250_v31, %v2202_v35 }
 0x21d   : > { %v2203_v11 = vadd.f32 %v2157_v26, %v2108_v6 }
 0x21e   : > { %v2318_v27 = vadd.f32 %v3970_v22, %v2298_v10 }
 0x21f   : > { %v1985_v19 = vpop.f32.mrf.mxu1  ;;  %v2172_v59 = vpop.f32.mrf.mxu0 }
 0x220   : > { %v2334_v30 = vmax.f32 %v2318_v27, 0.0  ;;  %v2021_v33 = vadd.f32 %v1985_v19, %v3893_v23 }
 0x222   : > { %v2065_v20 = vpop.f32.mrf.mxu2  ;;  %2902 = vmatmul.msk.f32.vlgmr.msrb.gmra.mxu1 %vm522_vm1, %v2334_v30 }
 0x223   : > { %v2253_v13 = vpop.f32.mrf.mxu3  ;;  %v2109_v54 = vadd.f32 %v2065_v20, %v2017_v32 }
 0x224   : > { %v2299_v37 = vadd.f32 %v2253_v13, %v2203_v11 }
 0x225   : > { %v2204_v18 = vadd.f32 %v2160_v40, %v2109_v54  ;;  %v2020_v40 = vadd.f32 %v1982_v3, %v3885_v62 }
 0x226   : > { %v2319_v15 = vadd.f32 %v3970_v22, %v2299_v37 }
 0x227   : > { %v1988_v60 = vpop.f32.mrf.mxu1  ;;  %v2175_v52 = vpop.f32.mrf.mxu0 }
 0x228   : > { %v2335_v63 = vmax.f32 %v2319_v15, 0.0  ;;  %v2022_v30 = vadd.f32 %v1988_v60, %v3901_v8 }
 0x22a   : > { %v2068_v24 = vpop.f32.mrf.mxu2  ;;  %2903 = vmatmul.msk.f32.gmra.mxu1 %vm522_vm1, %v2335_v63 }
 0x22b   : > { %v2256_v9 = vpop.f32.mrf.mxu3  ;;  %v2110_v47 = vadd.f32 %v2068_v24, %v2018_v21 }
 0x22c   : > { %v2300_v17 = vadd.f32 %v2256_v9, %v2204_v18 }
 0x22d   : > { %v2205_v26 = vadd.f32 %v2163_v4, %v2110_v47 }
 0x22e   : > { %v2320_v29 = vadd.f32 %v3970_v22, %v2300_v17 }
 0x22f   : > { %v1991_v4 = vpop.f32.mrf.mxu1  ;;  %v2178_v6 = vpop.f32.mrf.mxu0 }
 0x230   : > { %v2336_v48 = vmax.f32 %v2320_v29, 0.0  ;;  %v2023_v54 = vadd.f32 %v1991_v4, %v3908_v0 }
 0x232   : > { %v2071_v2 = vpop.f32.mrf.mxu2  ;;  %2904 = vmatmul.msk.f32.gmra.mxu1 %vm522_vm1, %v2336_v48 }
 0x233   : > { %v2259_v51 = vpop.f32.mrf.mxu3  ;;  %v2111_v58 = vadd.f32 %v2071_v2, %v2019_v28 }
 0x234   : > { %v2301_v34 = vadd.f32 %v2259_v51, %v2205_v26 }
 0x235   : > { %v2206_v41 = vadd.f32 %v2166_v44, %v2111_v58 }
 0x236   : > { %v2321_v14 = vadd.f32 %v3970_v22, %v2301_v34 }
 0x237   : > { %v1994_v11 = vpop.f32.mrf.mxu1  ;;  %v2181_v63 = vpop.f32.mrf.mxu0 }
 0x238   : > { %v2337_v45 = vmax.f32 %v2321_v14, 0.0  ;;  %v2024_v47 = vadd.f32 %v1994_v11, %v3915_v12 }
 0x23a   : > { %v2074_v53 = vpop.f32.mrf.mxu2  ;;  %2905 = vmatmul.msk.f32.gmra.mxu1 %vm522_vm1, %v2337_v45 }
 0x23b   : > { %v2262_v61 = vpop.f32.mrf.mxu3  ;;  %v2112_v50 = vadd.f32 %v2074_v53, %v2020_v40 }
 0x23c   : > { %v2302_v57 = vadd.f32 %v2262_v61, %v2206_v41 }
 0x23d   : > { %v2207_v43 = vadd.f32 %v2169_v7, %v2112_v50 }
 0x23e   : > { %v2322_v46 = vadd.f32 %v3970_v22, %v2302_v57 }
 0x23f   : > { %v1997_v9 = vpop.f32.mrf.mxu1  ;;  %v2184_v2 = vpop.f32.mrf.mxu0 }
 0x240   : > { %v2338_v42 = vmax.f32 %v2322_v46, 0.0  ;;  %v2025_v58 = vadd.f32 %v1997_v9, %v3923_v36 }
 0x242   : > { %v2077_v38 = vpop.f32.mrf.mxu2  ;;  %2906 = vmatmul.msk.f32.gmra.mxu1 %vm522_vm1, %v2338_v42 }
 0x243   : > { %v2265_v5 = vpop.f32.mrf.mxu3  ;;  %v2113_v31 = vadd.f32 %v2077_v38, %v2021_v33 }
 0x244   : > { %v2303_v35 = vadd.f32 %v2265_v5, %v2207_v43 }
 0x245   : > { %v2208_v10 = vadd.f32 %v2172_v59, %v2113_v31 }
 0x246   : > { %v2323_v39 = vadd.f32 %v3970_v22, %v2303_v35 }
 0x247   : > { %v2000_v26 = vpop.f32.mrf.mxu1  ;;  %v2187_v12 = vpop.f32.mrf.mxu0 }
 0x248   : > { %v2339_v25 = vmax.f32 %v2323_v39, 0.0  ;;  %v2026_v57 = vadd.f32 %v2000_v26, %v3931_v49 }
 0x24a   : > { %v2080_v62 = vpop.f32.mrf.mxu2  ;;  %2907 = vmatmul.msk.f32.gmra.mxu1 %vm522_vm1, %v2339_v25 }
 0x24b   : > { %v2268_v27 = vpop.f32.mrf.mxu3  ;;  %v2114_v44 = vadd.f32 %v2080_v62, %v2022_v30 }
 0x24c   : > { %v2304_v20 = vadd.f32 %v2268_v27, %v2208_v10 }
 0x24d   : > { %v2209_v37 = vadd.f32 %v2175_v52, %v2114_v44 }
 0x24e   : > { %v2324_v13 = vadd.f32 %v3970_v22, %v2304_v20 }
 0x24f   : > { %v2003_v40 = vpop.f32.mrf.mxu1  ;;  %v2190_v43 = vpop.f32.mrf.mxu0 }
 0x250   : > { %v2340_v32 = vmax.f32 %v2324_v13, 0.0  ;;  %v2027_v4 = vadd.f32 %v2003_v40, %v3940_v55 }
 0x252   : > { %v2083_v23 = vpop.f32.mrf.mxu2  ;;  %2908 = vmatmul.msk.f32.gmra.mxu1 %vm522_vm1, %v2340_v32 }
 0x253   : > { %v2271_v3 = vpop.f32.mrf.mxu3  ;;  %v2115_v24 = vadd.f32 %v2083_v23, %v2023_v54 }
 0x254   : > { %v2305_v15 = vadd.f32 %v2271_v3, %v2209_v37 }
 0x255   : > { %v2210_v17 = vadd.f32 %v2178_v6, %v2115_v24 }
 0x256   : > { %v2325_v18 = vadd.f32 %v3970_v22, %v2305_v15 }
 0x257   : > { %v2006_v35 = vpop.f32.mrf.mxu1  ;;  %v2193_v30 = vpop.f32.mrf.mxu0 }
 0x258   : > { %v2341_v8 = vmax.f32 %v2325_v18, 0.0  ;;  %v2028_v6 = vadd.f32 %v2006_v35, %v3950_v16 }
 0x25a   : > { %v2086_v21 = vpop.f32.mrf.mxu2  ;;  %2909 = vmatmul.msk.f32.gmra.mxu1 %vm522_vm1, %v2341_v8 }
 0x25b   : > { %v2274_v7 = vpop.f32.mrf.mxu3  ;;  %v2116_v19 = vadd.f32 %v2086_v21, %v2024_v47 }
 0x25c   : > { %v2306_v29 = vadd.f32 %v2274_v7, %v2210_v17 }
 0x25d   : > { %v2211_v28 = vadd.f32 %v2181_v63, %v2116_v19 }
 0x25e   : > { %v2326_v48 = vadd.f32 %v3970_v22, %v2306_v29 }
 0x25f   : > { %v2009_v44 = vpop.f32.mrf.mxu1  ;;  %v2196_v63 = vpop.f32.mrf.mxu0 }
 0x260   : > { %v2342_v0 = vmax.f32 %v2326_v48, 0.0  ;;  %v2029_v37 = vadd.f32 %v2009_v44, %v3960_v1  ;;  %v2979_v44 = vld [vmem:[%s3136_s27 + $0x38] sm:$0xff] }
 0x262   : > { %v2089_v51 = vpop.f32.mrf.mxu2  ;;  %2910 = vmatmul.msk.f32.gmra.mxu1 %vm522_vm1, %v2342_v0 }
 0x263   : > { %v2277_v34 = vpop.f32.mrf.mxu3  ;;  %v2117_v59 = vadd.f32 %v2089_v51, %v2025_v58 }
 0x264   : > { %v2307_v14 = vadd.f32 %v2277_v34, %v2211_v28  ;;  %v2972_v34 = vld [vmem:[%s3136_s27] sm:$0xff] }
 0x265   : > { %v2212_v41 = vadd.f32 %v2184_v2, %v2117_v59 }
 0x266   : > { %v2327_v45 = vadd.f32 %v3970_v22, %v2307_v14 }
 0x267   : > { %v2012_v24 = vpop.f32.mrf.mxu1  ;;  %v2199_v29 = vpop.f32.mrf.mxu0 }
 0x268   : > { %v2343_v60 = vmax.f32 %v2327_v45, 0.0  ;;  %v2030_v21 = vadd.f32 %v2012_v24, %v3965_v56  ;;  %v4022_v56 = vld [vmem:[%s4118_s8] ss:$0 sm:$0xff]  ;;  %v2973_v45 = vld [vmem:[%s3136_s27 + $0x8] sm:$0xff] }
 0x26a   : > { %v2092_v53 = vpop.f32.mrf.mxu2  ;;  %2911 = vmatmul.msk.f32.gmra.mxu1 %vm522_vm1, %v2343_v60 }
 0x26b   : > { %v2280_v61 = vpop.f32.mrf.mxu3  ;;  %v2118_v46 = vadd.f32 %v2092_v53, %v2026_v57 }
 0x26c   : > { %v2308_v50 = vadd.f32 %v2280_v61, %v2212_v41  ;;  %v2974_v61 = vld [vmem:[%s3136_s27 + $0x10] sm:$0xff] }
 0x26d   : > { %v2213_v38 = vadd.f32 %v2187_v12, %v2118_v46 }
 0x26e   : > { %v2328_v42 = vadd.f32 %v3970_v22, %v2308_v50 }
 0x270   : > { %v2344_v52 = vmax.f32 %v2328_v42, 0.0  ;;  %v2975_v42 = vld [vmem:[%s3136_s27 + $0x18] sm:$0xff] }
 0x272   : > { %v2095_v36 = vpop.f32.mrf.mxu2  ;;  %2912 = vmatmul.msk.f32.gmra.mxu1 %vm522_vm1, %v2344_v52 }
 0x273   : > { %v2283_v5 = vpop.f32.mrf.mxu3  ;;  %v2119_v31 = vadd.f32 %v2095_v36, %v2027_v4 }
 0x274   : > { %v2309_v33 = vadd.f32 %v2283_v5, %v2213_v38  ;;  %v2976_v5 = vld [vmem:[%s3136_s27 + $0x20] sm:$0xff] }
 0x275   : > { %v2214_v62 = vadd.f32 %v2190_v43, %v2119_v31 }
 0x276   : > { %v2329_v39 = vadd.f32 %v3970_v22, %v2309_v33 }
 0x278   : > { %v2345_v25 = vmax.f32 %v2329_v39, 0.0  ;;  %v2977_v39 = vld [vmem:[%s3136_s27 + $0x28] sm:$0xff] }
 0x27a   : > { %v2098_v49 = vpop.f32.mrf.mxu2  ;;  %2913 = vmatmul.msk.f32.gmra.mxu1 %vm522_vm1, %v2345_v25 }
 0x27b   : > { %v2286_v10 = vpop.f32.mrf.mxu3  ;;  %v2120_v20 = vadd.f32 %v2098_v49, %v2028_v6  ;;  %v2978_v6 = vld [vmem:[%s3136_s27 + $0x30] sm:$0xff] }
 0x27c   : > { %v2310_v27 = vadd.f32 %v2286_v10, %v2214_v62 }
 0x27d   : > { %v2215_v32 = vadd.f32 %v2193_v30, %v2120_v20 }
 0x27e   : > { %v2330_v11 = vadd.f32 %v3970_v22, %v2310_v27 }
 0x280   : > { %v2346_v55 = vmax.f32 %v2330_v11, 0.0 }
 0x282   : > { %v2101_v13 = vpop.f32.mrf.mxu2  ;;  %2914 = vmatmul.msk.f32.gmra.mxu1 %vm522_vm1, %v2346_v55 }
 0x283   : > { %v2289_v23 = vpop.f32.mrf.mxu3  ;;  %v2121_v54 = vadd.f32 %v2101_v13, %v2029_v37  ;;  %v2980_v37 = vld [vmem:[%s3136_s27 + $0x40] sm:$0xff] }
 0x284   : > { %v2311_v3 = vadd.f32 %v2289_v23, %v2215_v32 }
 0x285   : > { %v2216_v18 = vadd.f32 %v2196_v63, %v2121_v54 }
 0x286   : > { %v2331_v15 = vadd.f32 %v3970_v22, %v2311_v3 }
 0x288   : > { %v2347_v16 = vmax.f32 %v2331_v15, 0.0 }
 0x28a   : > { %2915 = vmatmul.msk.f32.gmra.mxu1 %vm522_vm1, %v2347_v16  ;;  %v2104_v9 = vpop.f32.mrf.mxu2  ;;  %v2981_v16 = vld [vmem:[%s3136_s27 + $0x48] sm:$0xff] }
 0x28b   : > { %v2292_v8 = vpop.f32.mrf.mxu3  ;;  %v2122_v7 = vadd.f32 %v2104_v9, %v2030_v21  ;;  %v2982_v21 = vld [vmem:[%s3136_s27 + $0x50] sm:$0xff] }
 0x28c   : > { %v2312_v17 = vadd.f32 %v2292_v8, %v2216_v18 }
 0x28d   : > { %v2217_v19 = vadd.f32 %v2199_v29, %v2122_v7  ;;  %v2983_v29 = vld [vmem:[%s3136_s27 + $0x58] sm:$0xff] }
 0x28e   : > { %v2332_v1 = vadd.f32 %v3970_v22, %v2312_v17 }
 0x290   : > { %v2348_v47 = vmax.f32 %v2332_v1, 0.0 }
 0x292   : > { %2916 = vmatmul.msk.f32.gmra.mxu1 %vm522_vm1, %v2348_v47 }
 0x293   : > { %v2295_v48 = vpop.f32.mrf.mxu3 }
 0x294   : > { %v2313_v2 = vadd.f32 %v2295_v48, %v2217_v19 }
 0x296   : > { %v2333_v0 = vadd.f32 %v3970_v22, %v2313_v2 }
 0x298   : > { %v2349_v26 = vmax.f32 %v2333_v0, 0.0 }
 0x29a   : > { %2917 = vmatmul.msk.f32.gmra.mxu1 %vm522_vm1, %v2349_v26  ;;  %v2984_v26 = vld [vmem:[%s3136_s27 + $0x60] sm:$0xff] }
 0x29f   : > { %v2423_v51 = vpop.f32.mrf.mxu1 }
 0x2a0   : > { %v2424_v28 = vadd.f32 %v4022_v56, %v2423_v51 }
 0x2a2   : > { %v2471_v58 = vadd.f32 %v2972_v34, %v2424_v28 }
 0x2a4   : > { %v2487_v22 = vmax.f32 %v2471_v58, 0.0 }
 0x2a6   : > { %2503 = vst.msk [vmem:[%s4031_s26] sm:$0xff] %vm522_vm1, %v2487_v22  ;;  %v2985_v22 = vld [vmem:[%s3136_s27 + $0x68] sm:$0xff] }
 0x2a7   : > { %v2426_v14 = vpop.f32.mrf.mxu1 }
 0x2a8   : > { %v2427_v59 = vadd.f32 %v4022_v56, %v2426_v14 }
 0x2aa   : > { %v2472_v60 = vadd.f32 %v2973_v45, %v2427_v59 }
 0x2ac   : > { %v2488_v12 = vmax.f32 %v2472_v60, 0.0 }
 0x2ae   : > { %2504 = vst.msk [vmem:[%s4031_s26 + $0x8] sm:$0xff] %vm522_vm1, %v2488_v12  ;;  %v2986_v12 = vld [vmem:[%s3136_s27 + $0x70] sm:$0xff] }
 0x2af   : > { %v2429_v53 = vpop.f32.mrf.mxu1 }
 0x2b0   : > { %v2430_v41 = vadd.f32 %v4022_v56, %v2429_v53 }
 0x2b2   : > { %v2473_v40 = vadd.f32 %v2974_v61, %v2430_v41 }
 0x2b4   : > { %v2489_v57 = vmax.f32 %v2473_v40, 0.0 }
 0x2b6   : > { %2505 = vst.msk [vmem:[%s4031_s26 + $0x10] sm:$0xff] %vm522_vm1, %v2489_v57  ;;  %v2987_v57 = vld [vmem:[%s3136_s27 + $0x78] sm:$0xff] }
 0x2b7   : > { %v2432_v50 = vpop.f32.mrf.mxu1 }
 0x2b8   : > { %v2433_v46 = vadd.f32 %v4022_v56, %v2432_v50 }
 0x2ba   : > { %v2474_v52 = vadd.f32 %v2975_v42, %v2433_v46 }
 0x2bc   : > { %v2490_v36 = vmax.f32 %v2474_v52, 0.0 }
 0x2be   : > { %2506 = vst.msk [vmem:[%s4031_s26 + $0x18] sm:$0xff] %vm522_vm1, %v2490_v36 }
 0x2bf   : > { %v2435_v38 = vpop.f32.mrf.mxu1 }
 0x2c0   : > { %v2436_v43 = vadd.f32 %v4022_v56, %v2435_v38 }
 0x2c2   : > { %v2475_v4 = vadd.f32 %v2976_v5, %v2436_v43 }
 0x2c4   : > { %v2491_v33 = vmax.f32 %v2475_v4, 0.0 }
 0x2c6   : > { %2507 = vst.msk [vmem:[%s4031_s26 + $0x20] sm:$0xff] %vm522_vm1, %v2491_v33 }
 0x2c7   : > { %v2438_v35 = vpop.f32.mrf.mxu1 }
 0x2c8   : > { %v2439_v31 = vadd.f32 %v4022_v56, %v2438_v35 }
 0x2ca   : > { %v2476_v25 = vadd.f32 %v2977_v39, %v2439_v31 }
 0x2cc   : > { %v2492_v49 = vmax.f32 %v2476_v25, 0.0 }
 0x2ce   : > { %2508 = vst.msk [vmem:[%s4031_s26 + $0x28] sm:$0xff] %vm522_vm1, %v2492_v49 }
 0x2cf   : > { %v2441_v62 = vpop.f32.mrf.mxu1 }
 0x2d0   : > { %v2442_v10 = vadd.f32 %v4022_v56, %v2441_v62 }
 0x2d2   : > { %v2477_v27 = vadd.f32 %v2978_v6, %v2442_v10 }
 0x2d4   : > { %v2493_v30 = vmax.f32 %v2477_v27, 0.0 }
 0x2d6   : > { %2509 = vst.msk [vmem:[%s4031_s26 + $0x30] sm:$0xff] %vm522_vm1, %v2493_v30 }
 0x2d7   : > { %v2444_v20 = vpop.f32.mrf.mxu1 }
 0x2d8   : > { %v2445_v11 = vadd.f32 %v4022_v56, %v2444_v20 }
 0x2da   : > { %v2478_v55 = vadd.f32 %v2979_v44, %v2445_v11 }
 0x2dc   : > { %v2494_v13 = vmax.f32 %v2478_v55, 0.0 }
 0x2de   : > { %2510 = vst.msk [vmem:[%s4031_s26 + $0x38] sm:$0xff] %vm522_vm1, %v2494_v13 }
 0x2df   : > { %v2447_v32 = vpop.f32.mrf.mxu1 }
 0x2e0   : > { %v2448_v23 = vadd.f32 %v4022_v56, %v2447_v32 }
 0x2e2   : > { %v2479_v3 = vadd.f32 %v2980_v37, %v2448_v23 }
 0x2e4   : > { %v2495_v54 = vmax.f32 %v2479_v3, 0.0 }
 0x2e6   : > { %2511 = vst.msk [vmem:[%s4031_s26 + $0x40] sm:$0xff] %vm522_vm1, %v2495_v54 }
 0x2e7   : > { %v2450_v15 = vpop.f32.mrf.mxu1 }
 0x2e8   : > { %v2451_v63 = vadd.f32 %v4022_v56, %v2450_v15 }
 0x2ea   : > { %v2480_v24 = vadd.f32 %v2981_v16, %v2451_v63 }
 0x2ec   : > { %v2496_v18 = vmax.f32 %v2480_v24, 0.0 }
 0x2ee   : > { %2512 = vst.msk [vmem:[%s4031_s26 + $0x48] sm:$0xff] %vm522_vm1, %v2496_v18 }
 0x2ef   : > { %v2453_v9 = vpop.f32.mrf.mxu1 }
 0x2f0   : > { %v2454_v8 = vadd.f32 %v4022_v56, %v2453_v9 }
 0x2f2   : > { %v2481_v17 = vadd.f32 %v2982_v21, %v2454_v8 }
 0x2f4   : > { %v2497_v7 = vmax.f32 %v2481_v17, 0.0 }
 0x2f6   : > { %2513 = vst.msk [vmem:[%s4031_s26 + $0x50] sm:$0xff] %vm522_vm1, %v2497_v7 }
 0x2f7   : > { %v2456_v1 = vpop.f32.mrf.mxu1 }
 0x2f8   : > { %v2457_v47 = vadd.f32 %v4022_v56, %v2456_v1 }
 0x2fa   : > { %v2482_v19 = vadd.f32 %v2983_v29, %v2457_v47 }
 0x2fc   : > { %v2498_v48 = vmax.f32 %v2482_v19, 0.0 }
 0x2fe   : > { %2514 = vst.msk [vmem:[%s4031_s26 + $0x58] sm:$0xff] %vm522_vm1, %v2498_v48 }
 0x2ff   : > { %v2459_v2 = vpop.f32.mrf.mxu1 }
 0x300   : > { %v2460_v0 = vadd.f32 %v4022_v56, %v2459_v2 }
 0x302   : > { %v2483_v51 = vadd.f32 %v2984_v26, %v2460_v0 }
 0x304   : > { %v2499_v28 = vmax.f32 %v2483_v51, 0.0 }
 0x306   : > { %2515 = vst.msk [vmem:[%s4031_s26 + $0x60] sm:$0xff] %vm522_vm1, %v2499_v28 }
 0x307   : > { %v2462_v34 = vpop.f32.mrf.mxu1 }
 0x308   : > { %v2463_v58 = vadd.f32 %v4022_v56, %v2462_v34 }
 0x30a   : > { %v2484_v14 = vadd.f32 %v2985_v22, %v2463_v58 }
 0x30c   : > { %v2500_v59 = vmax.f32 %v2484_v14, 0.0 }
 0x30e   : > { %2516 = vst.msk [vmem:[%s4031_s26 + $0x68] sm:$0xff] %vm522_vm1, %v2500_v59 }
 0x30f   : > { %v2465_v45 = vpop.f32.mrf.mxu1 }
 0x310   : > { %v2466_v60 = vadd.f32 %v4022_v56, %v2465_v45 }
 0x312   : > { %v2485_v53 = vadd.f32 %v2986_v12, %v2466_v60 }
 0x314   : > { %v2501_v41 = vmax.f32 %v2485_v53, 0.0 }
 0x316   : > { %2517 = vst.msk [vmem:[%s4031_s26 + $0x70] sm:$0xff] %vm522_vm1, %v2501_v41 }
 0x317   : > { %v2468_v61 = vpop.f32.mrf.mxu1 }
 0x318   : > { %v2469_v40 = vadd.f32 %v4022_v56, %v2468_v61 }
 0x31a   : > { %v2486_v50 = vadd.f32 %v2987_v57, %v2469_v40 }
 0x31c   : > { %v2502_v46 = vmax.f32 %v2486_v50, 0.0 }
 0x31e   : > { %2518 = vst.msk [vmem:[%s4031_s26 + $0x78] sm:$0xff] %vm522_vm1, %v2502_v46 }
 0x31f PF: > { %s19_s13 = sadd.s32 1, %s3026_s13   ;;  %s4150_s30 = smov %s3018_s11 }
 0x320   : > { %p16_p12 = scmp.ge.s32.totalorder %s19_s13, 6   ;;  %s4151_s10 = smov %s3022_s12 }
 0x321   : > { %s4152_s11 = smov %s4155_s14  ;;  %s4153_s12 = smov %s4159_s15 }
 0x322   :  { %18 = sbr.rel (!%p16_p12) target bundleno = 3 (0x3), region = 100 }

</bundles_post_ra>
